<compile_context>
chip_gen: v6e
topology: v6e:2x2x1
jax: 0.10.0
libtpu: 0.0.40
codegen_flags: <defaults>
</compile_context>

<pallas_src>
import math
import functools

import jax
import jax.numpy as jnp
from jax.experimental import pallas as pl
from jax.experimental.pallas import tpu as pltpu


def _round_up(x: int, m: int) -> int:
    return ((x + m - 1) // m) * m


def _vmem_capacity_bytes() -> int:
    """Per-core VMEM capacity; conservative fallback if the query fails."""
    try:
        return int(pltpu.get_tpu_info().vmem_capacity_bytes)
    except Exception:
        return 64 * 1024 * 1024   # v7x per-TC VMEM (smallest current generation)


def _cross_attention_kernel(x_ref, y_ref,
                            wq_ref, bq_ref,
                            wk_ref, bk_ref,
                            wv_ref, bv_ref,
                            wo_ref, bo_ref,
                            o_ref,
                            kt_scr, v_scr,
                            *, n_heads: int, d_head: int, skv: int):
    dt = x_ref.dtype                       # MXU operand dtype (bf16 by default)
    skv_pad = kt_scr.shape[1]
    scale = 1.0 / math.sqrt(d_head)

    # --- K / V projections: once per batch element (first q-tile), reused for
    # --- all later q-tiles of the same b (grid axis 1 is "arbitrary", so the
    # --- VMEM scratch persists across those grid steps).
    @pl.when(pl.program_id(1) == 0)
    def _():
        y = y_ref[0]                                               # (Skv_pad, dC)
        # K stored pre-transposed: kT = Wk @ y^T -> (dE, Skv_pad). Per-head row
        # slices are cheap sublane slices; QK^T then contracts on the RHS major
        # dim so no per-q-tile transpose is needed.
        kt = (jnp.dot(wk_ref[...], y.T, preferred_element_type=jnp.float32)
              + bk_ref[...])                                       # (dE, Skv_pad)
        kt_scr[...] = kt.astype(dt)
        v = (jnp.dot(y, wv_ref[...], preferred_element_type=jnp.float32)
             + bv_ref[...]).astype(dt)                             # (Skv_pad, dE)
        for h in range(n_heads):                                   # split once per b
            v_scr[h] = v[:, h * d_head:(h + 1) * d_head]

    # --- Q projection for this tile; 1/sqrt(d_head) folded in once.
    x = x_ref[0]                                                   # (TQ, dE)
    q = ((jnp.dot(x, wq_ref[...], preferred_element_type=jnp.float32)
          + bq_ref[...]) * scale).astype(dt)                       # (TQ, dE)

    # Mask for padded key columns (hoisted out of the head loop).
    if skv_pad != skv:
        col = jax.lax.broadcasted_iota(jnp.int32, (1, skv_pad), 1)
        key_bias = jnp.where(col < skv, 0.0, -1e30).astype(jnp.float32)
    else:
        key_bias = None

    # --- Per-head attention with the output projection fused into the merge:
    # --- out = sum_h O_h @ Wo[rows_h] + bo  (no concat, no scratch round-trip).
    acc = None
    for h in range(n_heads):
        lo, hi = h * d_head, (h + 1) * d_head
        s = jnp.dot(q[:, lo:hi], kt_scr[lo:hi, :],
                    preferred_element_type=jnp.float32)            # (TQ, Skv_pad)
        if key_bias is not None:
            s = s + key_bias
        # Softmax statistics stay in f32 (v5e has no bf16 VPU/EUP).
        m = jnp.max(s, axis=-1, keepdims=True)
        e = jnp.exp(s - m)
        l = jnp.sum(e, axis=-1, keepdims=True)
        p = (e * pl.reciprocal(l, approx=True)).astype(dt)         # (TQ, Skv_pad)
        o_h = jnp.dot(p, v_scr[h],
                      preferred_element_type=jnp.float32)          # (TQ, dH)
        c = jnp.dot(o_h.astype(dt), wo_ref[lo:hi, :],
                    preferred_element_type=jnp.float32)            # (TQ, dE)
        acc = c if acc is None else acc + c

    o_ref[0] = (acc + bo_ref[...]).astype(o_ref.dtype)


def cross_attention(x, y, params, *, n_heads: int,
                    mxu_dtype=jnp.bfloat16, q_tile=None):
    """x: (B, Sq, dE), y: (B, Skv, dC). params: PyTorch-layout weights/biases."""
    B, Sq, dE = x.shape
    By, Skv, dC = y.shape
    assert By == B and dE % n_heads == 0
    d_head = dE // n_heads
    out_dtype = x.dtype
    op_dtype = jnp.dtype(mxu_dtype) if mxu_dtype is not None else jnp.dtype(x.dtype)

    # Generation-aware sizing.
    vmem_cap = _vmem_capacity_bytes()
    if q_tile is None:
        q_tile = 512 if vmem_cap >= 96 * 1024 * 1024 else 256      # v5e/v6e vs v7x

    sub = 16 if op_dtype.itemsize < 4 else 8                       # bf16 packs 16 sublanes
    tq = min(_round_up(Sq, sub), _round_up(q_tile, sub))
    sq_pad = _round_up(Sq, tq)                                     # pad Sq, never one giant tile
    n_q_tiles = sq_pad // tq
    skv_pad = _round_up(Skv, 128)                                  # lane-dense scores / PV

    # Cast + pad activations (cheap XLA ops; bf16 halves the activation DMA).
    x_p = jnp.pad(x.astype(op_dtype), ((0, 0), (0, sq_pad - Sq), (0, 0)))
    y_p = jnp.pad(y.astype(op_dtype), ((0, 0), (0, skv_pad - Skv), (0, 0)))

    # Weight layouts: Wq/Wv/Wo pre-transposed (in, out); Wk kept native (out, in)
    # because the kernel builds K^T = Wk @ y^T directly. Biases in f32.
    wq_t = params["wq"].T.astype(op_dtype)
    wk = params["wk"].astype(op_dtype)
    wv_t = params["wv"].T.astype(op_dtype)
    wo_t = params["wo"].T.astype(op_dtype)
    bq = params["bq"].reshape(1, dE).astype(jnp.float32)
    bk = params["bk"].reshape(dE, 1).astype(jnp.float32)
    bv = params["bv"].reshape(1, dE).astype(jnp.float32)
    bo = params["bo"].reshape(1, dE).astype(jnp.float32)

    def _resident(shape):
        # Constant index_map + single buffer: resident weights, half the footprint.
        return pl.BlockSpec(shape, lambda b, i: (0, 0), pipeline_mode=pl.Buffered(1))

    kernel = functools.partial(_cross_attention_kernel,
                               n_heads=n_heads, d_head=d_head, skv=Skv)

    # VMEM footprint estimate -> generation-aware vmem_limit_bytes.
    opb = op_dtype.itemsize
    est = ((2 * dE * dE + 2 * dE * dC) * opb                       # resident weights (1x)
           + 2 * tq * dE * (opb + jnp.dtype(out_dtype).itemsize)   # x / out tiles (2x buffered)
           + 2 * skv_pad * dC * opb                                # y block
           + 2 * dE * skv_pad * opb                                # K^T / V scratch
           + (2 * tq * dE + 3 * tq * skv_pad + 2 * skv_pad * dE) * 4)  # f32 intermediates
    vmem_limit = int(min(max(2 * est, 24 * 1024 * 1024), vmem_cap * 7 // 10))

    flops = 2 * B * (sq_pad * dE * dE            # Q projection
                     + 2 * Skv * dC * dE         # K, V projections
                     + 2 * sq_pad * Skv * dE     # QK^T + PV over all heads
                     + sq_pad * dE * dE)         # output projection
    cost = pl.CostEstimate(
        flops=int(flops),
        transcendentals=int(B * n_heads * sq_pad * Skv),
        bytes_accessed=int((2 * B * Sq * dE + B * Skv * dC) * opb
                           + (2 * dE * dE + 2 * dE * dC + 4 * dE) * 4))

    grid_spec = pltpu.PrefetchScalarGridSpec(
        num_scalar_prefetch=0,
        grid=(B, n_q_tiles),
        in_specs=[
            pl.BlockSpec((1, tq, dE), lambda b, i: (b, i, 0)),      # x (query tile)
            pl.BlockSpec((1, skv_pad, dC), lambda b, i: (b, 0, 0)),  # y (full cross seq)
            _resident((dE, dE)),    # Wq^T
            _resident((1, dE)),     # bq
            _resident((dE, dC)),    # Wk (native, for K^T build)
            _resident((dE, 1)),     # bk (column)
            _resident((dC, dE)),    # Wv^T
            _resident((1, dE)),     # bv
            _resident((dE, dE)),    # Wo^T
            _resident((1, dE)),     # bo
        ],
        out_specs=pl.BlockSpec((1, tq, dE), lambda b, i: (b, i, 0)),
        scratch_shapes=[pltpu.VMEM((dE, skv_pad), op_dtype),              # K^T (per b)
                        pltpu.VMEM((n_heads, skv_pad, d_head), op_dtype)],  # V per head
    )

    out = pl.pallas_call(
        kernel,
        out_shape=jax.ShapeDtypeStruct((B, sq_pad, dE), out_dtype),
        grid_spec=grid_spec,
        compiler_params=pltpu.CompilerParams(
            # Axis 1 must be sequential so the K/V scratch is reused across q-tiles.
            dimension_semantics=("parallel", "arbitrary"),
            vmem_limit_bytes=vmem_limit,
        ),
        cost_estimate=cost,
    )(x_p, y_p, wq_t, bq, wk, bk, wv_t, bv, wo_t, bo)

    return out[:, :Sq, :] if sq_pad != Sq else out


def init_params(key, d_embedd, d_cross):
    """Deterministic nn.Linear-style init, PyTorch-native layout (out, in)."""
    ks = jax.random.split(key, 8)

    def linear(kw, kb, fan_in, fan_out):
        bound = 1.0 / math.sqrt(fan_in)
        w = jax.random.uniform(kw, (fan_out, fan_in), jnp.float32, -bound, bound)
        b = jax.random.uniform(kb, (fan_out,), jnp.float32, -bound, bound)
        return w, b

    wq, bq = linear(ks[0], ks[1], d_embedd, d_embedd)
    wk, bk = linear(ks[2], ks[3], d_cross, d_embedd)
    wv, bv = linear(ks[4], ks[5], d_cross, d_embedd)
    wo, bo = linear(ks[6], ks[7], d_embedd, d_embedd)
    return dict(wq=wq, bq=bq, wk=wk, bk=bk, wv=wv, bv=bv, wo=wo, bo=bo)


def cross_attention_ref(x, y, params, *, n_heads: int):
    """Pure-JAX reference matching the PyTorch forward semantics."""
    B, Sq, dE = x.shape
    d_head = dE // n_heads
    q = x @ params["wq"].T + params["bq"]
    k = y @ params["wk"].T + params["bk"]
    v = y @ params["wv"].T + params["bv"]
    q = q.reshape(B, Sq, n_heads, d_head).transpose(0, 2, 1, 3)
    k = k.reshape(B, -1, n_heads, d_head).transpose(0, 2, 1, 3)
    v = v.reshape(B, -1, n_heads, d_head).transpose(0, 2, 1, 3)
    w = jnp.einsum("bhqd,bhkd->bhqk", q, k) / math.sqrt(d_head)
    w = jax.nn.softmax(w, axis=-1)
    o = jnp.einsum("bhqk,bhkd->bhqd", w, v)
    o = o.transpose(0, 2, 1, 3).reshape(B, Sq, dE)
    return o @ params["wo"].T + params["bo"]


if __name__ == "__main__":
    # Small shapes consistent with CrossAttention(nHeads=4, dEmbedd=32, dCross=16)
    B, Sq, Skv = 2, 8, 8
    d_embedd, d_cross, n_heads = 32, 16, 4

    key = jax.random.PRNGKey(0)
    kx, ky, kp = jax.random.split(key, 3)
    x = jax.random.normal(kx, (B, Sq, d_embedd), jnp.float32)
    y = jax.random.normal(ky, (B, Skv, d_cross), jnp.float32)
    params = init_params(kp, d_embedd, d_cross)

    ref = cross_attention_ref(x, y, params, n_heads=n_heads)

    # Default path: bf16 MXU operands (f32 accumulation) + EUP approx reciprocal.
    out = jax.block_until_ready(cross_attention(x, y, params, n_heads=n_heads))
    assert out.shape == (B, Sq, d_embedd)
    assert jnp.allclose(out, ref, atol=3e-2, rtol=3e-2), "bf16 path mismatch vs reference"

    # Stricter numerical check with f32 MXU operands.
    out32 = jax.block_until_ready(
        cross_attention(x, y, params, n_heads=n_heads, mxu_dtype=jnp.float32))
    assert jnp.allclose(out32, ref, atol=5e-3, rtol=5e-3), "f32 path mismatch vs reference"

    print("KERNEL_OK")
</pallas_src>

<mosaic_0001>
module attributes {stable_mosaic.version = 11 : i64} {
  func.func @_cross_attention_kernel(%arg0: i32, %arg1: i32, %arg2: memref<1x16x32xbf16, #tpu.memory_space<vmem>>, %arg3: memref<1x128x16xbf16, #tpu.memory_space<vmem>>, %arg4: memref<32x32xbf16, #tpu.memory_space<vmem>>, %arg5: memref<1x32xf32, #tpu.memory_space<vmem>>, %arg6: memref<32x16xbf16, #tpu.memory_space<vmem>>, %arg7: memref<32x1xf32, #tpu.memory_space<vmem>>, %arg8: memref<16x32xbf16, #tpu.memory_space<vmem>>, %arg9: memref<1x32xf32, #tpu.memory_space<vmem>>, %arg10: memref<32x32xbf16, #tpu.memory_space<vmem>>, %arg11: memref<1x32xf32, #tpu.memory_space<vmem>>, %arg12: memref<1x16x32xf32, #tpu.memory_space<vmem>>, %arg13: memref<32x128xbf16, #tpu.memory_space<vmem>>, %arg14: memref<4x128x8xbf16, #tpu.memory_space<vmem>>) attributes {dimension_semantics = [#tpu.dimension_semantics<parallel>, #tpu.dimension_semantics<arbitrary>], iteration_bounds = array<i64: 2, 1>, scalar_prefetch = 0 : i64, scratch_operands = 2 : i64, tpu.core_type = #tpu.core_type<tc>, window_params = [{transform_indices = @transform_0, window_bounds = array<i64: 1, 16, 32>}, {transform_indices = @transform_1, window_bounds = array<i64: 1, 128, 16>}, {pipeline_mode = #tpu.pipeline_mode<synchronous>, transform_indices = @transform_2, window_bounds = array<i64: 32, 32>}, {pipeline_mode = #tpu.pipeline_mode<synchronous>, transform_indices = @transform_3, window_bounds = array<i64: 1, 32>}, {pipeline_mode = #tpu.pipeline_mode<synchronous>, transform_indices = @transform_4, window_bounds = array<i64: 32, 16>}, {pipeline_mode = #tpu.pipeline_mode<synchronous>, transform_indices = @transform_5, window_bounds = array<i64: 32, 1>}, {pipeline_mode = #tpu.pipeline_mode<synchronous>, transform_indices = @transform_6, window_bounds = array<i64: 16, 32>}, {pipeline_mode = #tpu.pipeline_mode<synchronous>, transform_indices = @transform_7, window_bounds = array<i64: 1, 32>}, {pipeline_mode = #tpu.pipeline_mode<synchronous>, transform_indices = @transform_8, window_bounds = array<i64: 32, 32>}, {pipeline_mode = #tpu.pipeline_mode<synchronous>, transform_indices = @transform_9, window_bounds = array<i64: 1, 32>}, {transform_indices = @transform_10, window_bounds = array<i64: 1, 16, 32>}]} {
    %c0_i32 = arith.constant 0 : i32
    %0 = arith.cmpi eq, %arg1, %c0_i32 : i32
    %1 = arith.extui %0 : i1 to i32
    %c0_i32_0 = arith.constant 0 : i32
    %2 = arith.cmpi ne, %1, %c0_i32_0 : i32
    scf.if %2 {
      %c0_57 = arith.constant 0 : index
      %c0_58 = arith.constant 0 : index
      %c0_59 = arith.constant 0 : index
      %116 = vector.load %arg3[%c0_57, %c0_58, %c0_59] : memref<1x128x16xbf16, #tpu.memory_space<vmem>>, vector<1x128x16xbf16>
      %117 = vector.shape_cast %116 : vector<1x128x16xbf16> to vector<128x16xbf16>
      %c0_60 = arith.constant 0 : index
      %c0_61 = arith.constant 0 : index
      %118 = vector.load %arg6[%c0_60, %c0_61] : memref<32x16xbf16, #tpu.memory_space<vmem>>, vector<32x16xbf16>
      %119 = tpu.transpose %117, [1, 0] : vector<128x16xbf16> -> vector<16x128xbf16>
      %cst_62 = arith.constant dense<0.000000e+00> : vector<32x128xf32>
      %120 = tpu.matmul %118, %119, %cst_62 {dimension_numbers = #tpu.dot_dimension_numbers<[1], [0], [0], [1], [0, 0, 1, 1], [], []>} : vector<32x16xbf16>, vector<16x128xbf16>, vector<32x128xf32> -> vector<32x128xf32>
      %c0_63 = arith.constant 0 : index
      %c0_64 = arith.constant 0 : index
      %121 = vector.load %arg7[%c0_63, %c0_64] : memref<32x1xf32, #tpu.memory_space<vmem>>, vector<32x1xf32>
      %122 = vector.broadcast %121 : vector<32x1xf32> to vector<32x128xf32>
      %123 = arith.addf %120, %122 : vector<32x128xf32>
      %124 = arith.truncf %123 : vector<32x128xf32> to vector<32x128xbf16>
      %c0_65 = arith.constant 0 : index
      %c0_66 = arith.constant 0 : index
      %125 = vector.load %arg13[%c0_65, %c0_66] : memref<32x128xbf16, #tpu.memory_space<vmem>>, vector<32x128xbf16>
      tpu.vector_store %arg13[%c0_65, %c0_66], %124 {strides = array<i32>} : memref<32x128xbf16, #tpu.memory_space<vmem>>, vector<32x128xbf16>,
      %c0_67 = arith.constant 0 : index
      %c0_68 = arith.constant 0 : index
      %126 = vector.load %arg8[%c0_67, %c0_68] : memref<16x32xbf16, #tpu.memory_space<vmem>>, vector<16x32xbf16>
      %cst_69 = arith.constant dense<0.000000e+00> : vector<128x32xf32>
      %127 = tpu.matmul %117, %126, %cst_69 {dimension_numbers = #tpu.dot_dimension_numbers<[1], [0], [0], [1], [0, 0, 1, 1], [], []>} : vector<128x16xbf16>, vector<16x32xbf16>, vector<128x32xf32> -> vector<128x32xf32>
      %c0_70 = arith.constant 0 : index
      %c0_71 = arith.constant 0 : index
      %128 = vector.load %arg9[%c0_70, %c0_71] : memref<1x32xf32, #tpu.memory_space<vmem>>, vector<1x32xf32>
      %129 = vector.broadcast %128 : vector<1x32xf32> to vector<128x32xf32>
      %130 = arith.addf %127, %129 : vector<128x32xf32>
      %131 = arith.truncf %130 : vector<128x32xf32> to vector<128x32xbf16>
      %132 = vector.extract_strided_slice %131 {offsets = [0, 0], sizes = [128, 8], strides = [1, 1]} : vector<128x32xbf16> to vector<128x8xbf16>
      %c0_72 = arith.constant 0 : index
      %c0_73 = arith.constant 0 : index
      %c0_74 = arith.constant 0 : index
      %133 = vector.load %arg14[%c0_72, %c0_73, %c0_74] : memref<4x128x8xbf16, #tpu.memory_space<vmem>>, vector<1x128x8xbf16>
      %134 = vector.shape_cast %133 : vector<1x128x8xbf16> to vector<128x8xbf16>
      %135 = vector.shape_cast %132 : vector<128x8xbf16> to vector<1x128x8xbf16>
      tpu.vector_store %arg14[%c0_72, %c0_73, %c0_74], %135 {strides = array<i32>} : memref<4x128x8xbf16, #tpu.memory_space<vmem>>, vector<1x128x8xbf16>,
      %136 = vector.extract_strided_slice %131 {offsets = [0, 8], sizes = [128, 8], strides = [1, 1]} : vector<128x32xbf16> to vector<128x8xbf16>
      %c1_75 = arith.constant 1 : index
      %c0_76 = arith.constant 0 : index
      %c0_77 = arith.constant 0 : index
      %137 = vector.load %arg14[%c1_75, %c0_76, %c0_77] : memref<4x128x8xbf16, #tpu.memory_space<vmem>>, vector<1x128x8xbf16>
      %138 = vector.shape_cast %137 : vector<1x128x8xbf16> to vector<128x8xbf16>
      %139 = vector.shape_cast %136 : vector<128x8xbf16> to vector<1x128x8xbf16>
      tpu.vector_store %arg14[%c1_75, %c0_76, %c0_77], %139 {strides = array<i32>} : memref<4x128x8xbf16, #tpu.memory_space<vmem>>, vector<1x128x8xbf16>,
      %140 = vector.extract_strided_slice %131 {offsets = [0, 16], sizes = [128, 8], strides = [1, 1]} : vector<128x32xbf16> to vector<128x8xbf16>
      %c2_78 = arith.constant 2 : index
      %c0_79 = arith.constant 0 : index
      %c0_80 = arith.constant 0 : index
      %141 = vector.load %arg14[%c2_78, %c0_79, %c0_80] : memref<4x128x8xbf16, #tpu.memory_space<vmem>>, vector<1x128x8xbf16>
      %142 = vector.shape_cast %141 : vector<1x128x8xbf16> to vector<128x8xbf16>
      %143 = vector.shape_cast %140 : vector<128x8xbf16> to vector<1x128x8xbf16>
      tpu.vector_store %arg14[%c2_78, %c0_79, %c0_80], %143 {strides = array<i32>} : memref<4x128x8xbf16, #tpu.memory_space<vmem>>, vector<1x128x8xbf16>,
      %144 = vector.extract_strided_slice %131 {offsets = [0, 24], sizes = [128, 8], strides = [1, 1]} : vector<128x32xbf16> to vector<128x8xbf16>
      %c3_81 = arith.constant 3 : index
      %c0_82 = arith.constant 0 : index
      %c0_83 = arith.constant 0 : index
      %145 = vector.load %arg14[%c3_81, %c0_82, %c0_83] : memref<4x128x8xbf16, #tpu.memory_space<vmem>>, vector<1x128x8xbf16>
      %146 = vector.shape_cast %145 : vector<1x128x8xbf16> to vector<128x8xbf16>
      %147 = vector.shape_cast %144 : vector<128x8xbf16> to vector<1x128x8xbf16>
      tpu.vector_store %arg14[%c3_81, %c0_82, %c0_83], %147 {strides = array<i32>} : memref<4x128x8xbf16, #tpu.memory_space<vmem>>, vector<1x128x8xbf16>,
    } else {
    }
    %c0 = arith.constant 0 : index
    %c0_1 = arith.constant 0 : index
    %c0_2 = arith.constant 0 : index
    %3 = vector.load %arg2[%c0, %c0_1, %c0_2] : memref<1x16x32xbf16, #tpu.memory_space<vmem>>, vector<1x16x32xbf16>
    %4 = vector.shape_cast %3 : vector<1x16x32xbf16> to vector<16x32xbf16>
    %c0_3 = arith.constant 0 : index
    %c0_4 = arith.constant 0 : index
    %5 = vector.load %arg4[%c0_3, %c0_4] : memref<32x32xbf16, #tpu.memory_space<vmem>>, vector<32x32xbf16>
    %cst = arith.constant dense<0.000000e+00> : vector<16x32xf32>
    %6 = tpu.matmul %4, %5, %cst {dimension_numbers = #tpu.dot_dimension_numbers<[1], [0], [0], [1], [0, 0, 1, 1], [], []>} : vector<16x32xbf16>, vector<32x32xbf16>, vector<16x32xf32> -> vector<16x32xf32>
    %c0_5 = arith.constant 0 : index
    %c0_6 = arith.constant 0 : index
    %7 = vector.load %arg5[%c0_5, %c0_6] : memref<1x32xf32, #tpu.memory_space<vmem>>, vector<1x32xf32>
    %8 = vector.broadcast %7 : vector<1x32xf32> to vector<16x32xf32>
    %9 = arith.addf %6, %8 : vector<16x32xf32>
    %cst_7 = arith.constant 0.353553385 : f32
    %10 = vector.broadcast %cst_7 : f32 to vector<16x32xf32>
    %11 = arith.mulf %9, %10 : vector<16x32xf32>
    %12 = arith.truncf %11 : vector<16x32xf32> to vector<16x32xbf16>
    %13 = tpu.iota {dimensions = array<i32: 1>} : vector<1x128xi32>
    %c8_i32 = arith.constant 8 : i32
    %14 = vector.broadcast %c8_i32 : i32 to vector<1x128xi32>
    %15 = arith.cmpi slt, %13, %14 : vector<1x128xi32>
    %cst_8 = arith.constant 0.000000e+00 : f32
    %cst_9 = arith.constant -1.000000e+30 : f32
    %16 = vector.broadcast %cst_8 : f32 to vector<1x128xf32>
    %17 = vector.broadcast %cst_9 : f32 to vector<1x128xf32>
    %18 = arith.select %15, %16, %17 : vector<1x128xi1>, vector<1x128xf32>
    %19 = vector.extract_strided_slice %12 {offsets = [0, 0], sizes = [16, 8], strides = [1, 1]} : vector<16x32xbf16> to vector<16x8xbf16>
    %c0_10 = arith.constant 0 : index
    %c0_11 = arith.constant 0 : index
    %20 = vector.load %arg13[%c0_10, %c0_11] : memref<32x128xbf16, #tpu.memory_space<vmem>>, vector<8x128xbf16>
    %cst_12 = arith.constant dense<0.000000e+00> : vector<16x128xf32>
    %21 = tpu.matmul %19, %20, %cst_12 {dimension_numbers = #tpu.dot_dimension_numbers<[1], [0], [0], [1], [0, 0, 1, 1], [], []>} : vector<16x8xbf16>, vector<8x128xbf16>, vector<16x128xf32> -> vector<16x128xf32>
    %22 = vector.broadcast %18 : vector<1x128xf32> to vector<16x128xf32>
    %23 = arith.addf %21, %22 : vector<16x128xf32>
    %cst_13 = arith.constant dense<0xFF800000> : vector<16xf32>
    %24 = vector.multi_reduction <maximumf>, %23, %cst_13 [1] : vector<16x128xf32> to vector<16xf32>
    %25 = vector.shape_cast %24 : vector<16xf32> to vector<16x1xf32>
    %26 = vector.broadcast %25 : vector<16x1xf32> to vector<16x128xf32>
    %27 = arith.subf %23, %26 : vector<16x128xf32>
    %28 = math.exp %27 : vector<16x128xf32>
    %cst_14 = arith.constant dense<0.000000e+00> : vector<16xf32>
    %29 = vector.multi_reduction <add>, %28, %cst_14 [1] : vector<16x128xf32> to vector<16xf32>
    %30 = vector.shape_cast %29 : vector<16xf32> to vector<16x1xf32>
    %31 = tpu.reciprocal %30 {approx = true} : vector<16x1xf32> -> vector<16x1xf32>
    %32 = vector.broadcast %31 : vector<16x1xf32> to vector<16x128xf32>
    %33 = arith.mulf %28, %32 : vector<16x128xf32>
    %34 = arith.truncf %33 : vector<16x128xf32> to vector<16x128xbf16>
    %c0_15 = arith.constant 0 : index
    %c0_16 = arith.constant 0 : index
    %c0_17 = arith.constant 0 : index
    %35 = vector.load %arg14[%c0_15, %c0_16, %c0_17] : memref<4x128x8xbf16, #tpu.memory_space<vmem>>, vector<1x128x8xbf16>
    %36 = vector.shape_cast %35 : vector<1x128x8xbf16> to vector<128x8xbf16>
    %cst_18 = arith.constant dense<0.000000e+00> : vector<16x8xf32>
    %37 = tpu.matmul %34, %36, %cst_18 {dimension_numbers = #tpu.dot_dimension_numbers<[1], [0], [0], [1], [0, 0, 1, 1], [], []>} : vector<16x128xbf16>, vector<128x8xbf16>, vector<16x8xf32> -> vector<16x8xf32>
    %38 = arith.truncf %37 : vector<16x8xf32> to vector<16x8xbf16>
    %c0_19 = arith.constant 0 : index
    %c0_20 = arith.constant 0 : index
    %39 = vector.load %arg10[%c0_19, %c0_20] : memref<32x32xbf16, #tpu.memory_space<vmem>>, vector<8x32xbf16>
    %cst_21 = arith.constant dense<0.000000e+00> : vector<16x32xf32>
    %40 = tpu.matmul %38, %39, %cst_21 {dimension_numbers = #tpu.dot_dimension_numbers<[1], [0], [0], [1], [0, 0, 1, 1], [], []>} : vector<16x8xbf16>, vector<8x32xbf16>, vector<16x32xf32> -> vector<16x32xf32>
    %41 = vector.extract_strided_slice %12 {offsets = [0, 8], sizes = [16, 8], strides = [1, 1]} : vector<16x32xbf16> to vector<16x8xbf16>
    %c8 = arith.constant 8 : index
    %c0_22 = arith.constant 0 : index
    %42 = vector.load %arg13[%c8, %c0_22] : memref<32x128xbf16, #tpu.memory_space<vmem>>, vector<8x128xbf16>
    %cst_23 = arith.constant dense<0.000000e+00> : vector<16x128xf32>
    %43 = tpu.matmul %41, %42, %cst_23 {dimension_numbers = #tpu.dot_dimension_numbers<[1], [0], [0], [1], [0, 0, 1, 1], [], []>} : vector<16x8xbf16>, vector<8x128xbf16>, vector<16x128xf32> -> vector<16x128xf32>
    %44 = vector.broadcast %18 : vector<1x128xf32> to vector<16x128xf32>
    %45 = arith.addf %43, %44 : vector<16x128xf32>
    %cst_24 = arith.constant dense<0xFF800000> : vector<16xf32>
    %46 = vector.multi_reduction <maximumf>, %45, %cst_24 [1] : vector<16x128xf32> to vector<16xf32>
    %47 = vector.shape_cast %46 : vector<16xf32> to vector<16x1xf32>
    %48 = vector.broadcast %47 : vector<16x1xf32> to vector<16x128xf32>
    %49 = arith.subf %45, %48 : vector<16x128xf32>
    %50 = math.exp %49 : vector<16x128xf32>
    %cst_25 = arith.constant dense<0.000000e+00> : vector<16xf32>
    %51 = vector.multi_reduction <add>, %50, %cst_25 [1] : vector<16x128xf32> to vector<16xf32>
    %52 = vector.shape_cast %51 : vector<16xf32> to vector<16x1xf32>
    %53 = tpu.reciprocal %52 {approx = true} : vector<16x1xf32> -> vector<16x1xf32>
    %54 = vector.broadcast %53 : vector<16x1xf32> to vector<16x128xf32>
    %55 = arith.mulf %50, %54 : vector<16x128xf32>
    %56 = arith.truncf %55 : vector<16x128xf32> to vector<16x128xbf16>
    %c1 = arith.constant 1 : index
    %c0_26 = arith.constant 0 : index
    %c0_27 = arith.constant 0 : index
    %57 = vector.load %arg14[%c1, %c0_26, %c0_27] : memref<4x128x8xbf16, #tpu.memory_space<vmem>>, vector<1x128x8xbf16>
    %58 = vector.shape_cast %57 : vector<1x128x8xbf16> to vector<128x8xbf16>
    %cst_28 = arith.constant dense<0.000000e+00> : vector<16x8xf32>
    %59 = tpu.matmul %56, %58, %cst_28 {dimension_numbers = #tpu.dot_dimension_numbers<[1], [0], [0], [1], [0, 0, 1, 1], [], []>} : vector<16x128xbf16>, vector<128x8xbf16>, vector<16x8xf32> -> vector<16x8xf32>
    %60 = arith.truncf %59 : vector<16x8xf32> to vector<16x8xbf16>
    %c8_29 = arith.constant 8 : index
    %c0_30 = arith.constant 0 : index
    %61 = vector.load %arg10[%c8_29, %c0_30] : memref<32x32xbf16, #tpu.memory_space<vmem>>, vector<8x32xbf16>
    %cst_31 = arith.constant dense<0.000000e+00> : vector<16x32xf32>
    %62 = tpu.matmul %60, %61, %cst_31 {dimension_numbers = #tpu.dot_dimension_numbers<[1], [0], [0], [1], [0, 0, 1, 1], [], []>} : vector<16x8xbf16>, vector<8x32xbf16>, vector<16x32xf32> -> vector<16x32xf32>
    %63 = arith.addf %40, %62 : vector<16x32xf32>
    %64 = vector.extract_strided_slice %12 {offsets = [0, 16], sizes = [16, 8], strides = [1, 1]} : vector<16x32xbf16> to vector<16x8xbf16>
    %c16 = arith.constant 16 : index
    %c0_32 = arith.constant 0 : index
    %65 = vector.load %arg13[%c16, %c0_32] : memref<32x128xbf16, #tpu.memory_space<vmem>>, vector<8x128xbf16>
    %cst_33 = arith.constant dense<0.000000e+00> : vector<16x128xf32>
    %66 = tpu.matmul %64, %65, %cst_33 {dimension_numbers = #tpu.dot_dimension_numbers<[1], [0], [0], [1], [0, 0, 1, 1], [], []>} : vector<16x8xbf16>, vector<8x128xbf16>, vector<16x128xf32> -> vector<16x128xf32>
    %67 = vector.broadcast %18 : vector<1x128xf32> to vector<16x128xf32>
    %68 = arith.addf %66, %67 : vector<16x128xf32>
    %cst_34 = arith.constant dense<0xFF800000> : vector<16xf32>
    %69 = vector.multi_reduction <maximumf>, %68, %cst_34 [1] : vector<16x128xf32> to vector<16xf32>
    %70 = vector.shape_cast %69 : vector<16xf32> to vector<16x1xf32>
    %71 = vector.broadcast %70 : vector<16x1xf32> to vector<16x128xf32>
    %72 = arith.subf %68, %71 : vector<16x128xf32>
    %73 = math.exp %72 : vector<16x128xf32>
    %cst_35 = arith.constant dense<0.000000e+00> : vector<16xf32>
    %74 = vector.multi_reduction <add>, %73, %cst_35 [1] : vector<16x128xf32> to vector<16xf32>
    %75 = vector.shape_cast %74 : vector<16xf32> to vector<16x1xf32>
    %76 = tpu.reciprocal %75 {approx = true} : vector<16x1xf32> -> vector<16x1xf32>
    %77 = vector.broadcast %76 : vector<16x1xf32> to vector<16x128xf32>
    %78 = arith.mulf %73, %77 : vector<16x128xf32>
    %79 = arith.truncf %78 : vector<16x128xf32> to vector<16x128xbf16>
    %c2 = arith.constant 2 : index
    %c0_36 = arith.constant 0 : index
    %c0_37 = arith.constant 0 : index
    %80 = vector.load %arg14[%c2, %c0_36, %c0_37] : memref<4x128x8xbf16, #tpu.memory_space<vmem>>, vector<1x128x8xbf16>
    %81 = vector.shape_cast %80 : vector<1x128x8xbf16> to vector<128x8xbf16>
    %cst_38 = arith.constant dense<0.000000e+00> : vector<16x8xf32>
    %82 = tpu.matmul %79, %81, %cst_38 {dimension_numbers = #tpu.dot_dimension_numbers<[1], [0], [0], [1], [0, 0, 1, 1], [], []>} : vector<16x128xbf16>, vector<128x8xbf16>, vector<16x8xf32> -> vector<16x8xf32>
    %83 = arith.truncf %82 : vector<16x8xf32> to vector<16x8xbf16>
    %c16_39 = arith.constant 16 : index
    %c0_40 = arith.constant 0 : index
    %84 = vector.load %arg10[%c16_39, %c0_40] : memref<32x32xbf16, #tpu.memory_space<vmem>>, vector<8x32xbf16>
    %cst_41 = arith.constant dense<0.000000e+00> : vector<16x32xf32>
    %85 = tpu.matmul %83, %84, %cst_41 {dimension_numbers = #tpu.dot_dimension_numbers<[1], [0], [0], [1], [0, 0, 1, 1], [], []>} : vector<16x8xbf16>, vector<8x32xbf16>, vector<16x32xf32> -> vector<16x32xf32>
    %86 = arith.addf %63, %85 : vector<16x32xf32>
    %87 = vector.extract_strided_slice %12 {offsets = [0, 24], sizes = [16, 8], strides = [1, 1]} : vector<16x32xbf16> to vector<16x8xbf16>
    %c24 = arith.constant 24 : index
    %c0_42 = arith.constant 0 : index
    %88 = vector.load %arg13[%c24, %c0_42] : memref<32x128xbf16, #tpu.memory_space<vmem>>, vector<8x128xbf16>
    %cst_43 = arith.constant dense<0.000000e+00> : vector<16x128xf32>
    %89 = tpu.matmul %87, %88, %cst_43 {dimension_numbers = #tpu.dot_dimension_numbers<[1], [0], [0], [1], [0, 0, 1, 1], [], []>} : vector<16x8xbf16>, vector<8x128xbf16>, vector<16x128xf32> -> vector<16x128xf32>
    %90 = vector.broadcast %18 : vector<1x128xf32> to vector<16x128xf32>
    %91 = arith.addf %89, %90 : vector<16x128xf32>
    %cst_44 = arith.constant dense<0xFF800000> : vector<16xf32>
    %92 = vector.multi_reduction <maximumf>, %91, %cst_44 [1] : vector<16x128xf32> to vector<16xf32>
    %93 = vector.shape_cast %92 : vector<16xf32> to vector<16x1xf32>
    %94 = vector.broadcast %93 : vector<16x1xf32> to vector<16x128xf32>
    %95 = arith.subf %91, %94 : vector<16x128xf32>
    %96 = math.exp %95 : vector<16x128xf32>
    %cst_45 = arith.constant dense<0.000000e+00> : vector<16xf32>
    %97 = vector.multi_reduction <add>, %96, %cst_45 [1] : vector<16x128xf32> to vector<16xf32>
    %98 = vector.shape_cast %97 : vector<16xf32> to vector<16x1xf32>
    %99 = tpu.reciprocal %98 {approx = true} : vector<16x1xf32> -> vector<16x1xf32>
    %100 = vector.broadcast %99 : vector<16x1xf32> to vector<16x128xf32>
    %101 = arith.mulf %96, %100 : vector<16x128xf32>
    %102 = arith.truncf %101 : vector<16x128xf32> to vector<16x128xbf16>
    %c3 = arith.constant 3 : index
    %c0_46 = arith.constant 0 : index
    %c0_47 = arith.constant 0 : index
    %103 = vector.load %arg14[%c3, %c0_46, %c0_47] : memref<4x128x8xbf16, #tpu.memory_space<vmem>>, vector<1x128x8xbf16>
    %104 = vector.shape_cast %103 : vector<1x128x8xbf16> to vector<128x8xbf16>
    %cst_48 = arith.constant dense<0.000000e+00> : vector<16x8xf32>
    %105 = tpu.matmul %102, %104, %cst_48 {dimension_numbers = #tpu.dot_dimension_numbers<[1], [0], [0], [1], [0, 0, 1, 1], [], []>} : vector<16x128xbf16>, vector<128x8xbf16>, vector<16x8xf32> -> vector<16x8xf32>
    %106 = arith.truncf %105 : vector<16x8xf32> to vector<16x8xbf16>
    %c24_49 = arith.constant 24 : index
    %c0_50 = arith.constant 0 : index
    %107 = vector.load %arg10[%c24_49, %c0_50] : memref<32x32xbf16, #tpu.memory_space<vmem>>, vector<8x32xbf16>
    %cst_51 = arith.constant dense<0.000000e+00> : vector<16x32xf32>
    %108 = tpu.matmul %106, %107, %cst_51 {dimension_numbers = #tpu.dot_dimension_numbers<[1], [0], [0], [1], [0, 0, 1, 1], [], []>} : vector<16x8xbf16>, vector<8x32xbf16>, vector<16x32xf32> -> vector<16x32xf32>
    %109 = arith.addf %86, %108 : vector<16x32xf32>
    %c0_52 = arith.constant 0 : index
    %c0_53 = arith.constant 0 : index
    %110 = vector.load %arg11[%c0_52, %c0_53] : memref<1x32xf32, #tpu.memory_space<vmem>>, vector<1x32xf32>
    %111 = vector.broadcast %110 : vector<1x32xf32> to vector<16x32xf32>
    %112 = arith.addf %109, %111 : vector<16x32xf32>
    %c0_54 = arith.constant 0 : index
    %c0_55 = arith.constant 0 : index
    %c0_56 = arith.constant 0 : index
    %113 = vector.load %arg12[%c0_54, %c0_55, %c0_56] : memref<1x16x32xf32, #tpu.memory_space<vmem>>, vector<1x16x32xf32>
    %114 = vector.shape_cast %113 : vector<1x16x32xf32> to vector<16x32xf32>
    %115 = vector.shape_cast %112 : vector<16x32xf32> to vector<1x16x32xf32>
    tpu.vector_store %arg12[%c0_54, %c0_55, %c0_56], %115 {strides = array<i32>} : memref<1x16x32xf32, #tpu.memory_space<vmem>>, vector<1x16x32xf32>,
    return
  }
  func.func @transform_0(%arg0: i32, %arg1: i32) -> (i32, i32, i32) {
    %c0_i32 = arith.constant 0 : i32
    %c0_i32_0 = arith.constant 0 : i32
    return %arg0, %arg1, %c0_i32 : i32, i32, i32
  }
  func.func @transform_1(%arg0: i32, %arg1: i32) -> (i32, i32, i32) {
    %c0_i32 = arith.constant 0 : i32
    %c0_i32_0 = arith.constant 0 : i32
    %c0_i32_1 = arith.constant 0 : i32
    return %arg0, %c0_i32, %c0_i32_0 : i32, i32, i32
  }
  func.func @transform_2(%arg0: i32, %arg1: i32) -> (i32, i32) {
    %c0_i32 = arith.constant 0 : i32
    %c0_i32_0 = arith.constant 0 : i32
    %c0_i32_1 = arith.constant 0 : i32
    return %c0_i32, %c0_i32_0 : i32, i32
  }
  func.func @transform_3(%arg0: i32, %arg1: i32) -> (i32, i32) {
    %c0_i32 = arith.constant 0 : i32
    %c0_i32_0 = arith.constant 0 : i32
    %c0_i32_1 = arith.constant 0 : i32
    return %c0_i32, %c0_i32_0 : i32, i32
  }
  func.func @transform_4(%arg0: i32, %arg1: i32) -> (i32, i32) {
    %c0_i32 = arith.constant 0 : i32
    %c0_i32_0 = arith.constant 0 : i32
    %c0_i32_1 = arith.constant 0 : i32
    return %c0_i32, %c0_i32_0 : i32, i32
  }
  func.func @transform_5(%arg0: i32, %arg1: i32) -> (i32, i32) {
    %c0_i32 = arith.constant 0 : i32
    %c0_i32_0 = arith.constant 0 : i32
    %c0_i32_1 = arith.constant 0 : i32
    return %c0_i32, %c0_i32_0 : i32, i32
  }
  func.func @transform_6(%arg0: i32, %arg1: i32) -> (i32, i32) {
    %c0_i32 = arith.constant 0 : i32
    %c0_i32_0 = arith.constant 0 : i32
    %c0_i32_1 = arith.constant 0 : i32
    return %c0_i32, %c0_i32_0 : i32, i32
  }
  func.func @transform_7(%arg0: i32, %arg1: i32) -> (i32, i32) {
    %c0_i32 = arith.constant 0 : i32
    %c0_i32_0 = arith.constant 0 : i32
    %c0_i32_1 = arith.constant 0 : i32
    return %c0_i32, %c0_i32_0 : i32, i32
  }
  func.func @transform_8(%arg0: i32, %arg1: i32) -> (i32, i32) {
    %c0_i32 = arith.constant 0 : i32
    %c0_i32_0 = arith.constant 0 : i32
    %c0_i32_1 = arith.constant 0 : i32
    return %c0_i32, %c0_i32_0 : i32, i32
  }
  func.func @transform_9(%arg0: i32, %arg1: i32) -> (i32, i32) {
    %c0_i32 = arith.constant 0 : i32
    %c0_i32_0 = arith.constant 0 : i32
    %c0_i32_1 = arith.constant 0 : i32
    return %c0_i32, %c0_i32_0 : i32, i32
  }
  func.func @transform_10(%arg0: i32, %arg1: i32) -> (i32, i32, i32) {
    %c0_i32 = arith.constant 0 : i32
    %c0_i32_0 = arith.constant 0 : i32
    return %arg0, %arg1, %c0_i32 : i32, i32, i32
  }
}

</mosaic_0001>

<bundles_post_ra>
// kernel: tpu_custom_call.1
= control target key start
LH: loop header
LB: loop body
LE: loop exit
PB: predicated region body
PF: predicated region fallthrough
CT: control target
= control target key end

     0   :  { %s3325_s0 = inlined_call_operand.vmem [shape: bf16[2,16,32], index: 0, kind: input, shape index: {}]   ;;  %s3326_s1 = inlined_call_operand.vmem [shape: bf16[2,128,16], index: 1, kind: input, shape index: {}]   ;;  %s3327_s2 = inlined_call_operand.vmem [shape: bf16[32,32], index: 2, kind: input, shape index: {}]   ;;  %s3328_s3 = inlined_call_operand.vmem [shape: f32[1,32], index: 3, kind: input, shape index: {}]   ;;  %s3329_s4 = inlined_call_operand.vmem [shape: bf16[32,16], index: 4, kind: input, shape index: {}]   ;;  %s3330_s5 = inlined_call_operand.vmem [shape: f32[32,1], index: 5, kind: input, shape index: {}]   ;;  %s3331_s6 = inlined_call_operand.vmem [shape: bf16[16,32], index: 6, kind: input, shape index: {}]   ;;  %s3332_s7 = inlined_call_operand.vmem [shape: f32[1,32], index: 7, kind: input, shape index: {}]   ;;  %s3333_s8 = inlined_call_operand.vmem [shape: bf16[32,32], index: 8, kind: input, shape index: {}]   ;;  %s3334_s9 = inlined_call_operand.vmem [shape: f32[1,32], index: 9, kind: input, shape index: {}]   ;;  %s3335_s10 = inlined_call_operand.hbm [shape: f32[2,16,32], index: 10, kind: output, shape index: {}]  }
   0x1   :  { %3336 = sst [smem:[#allocation7_spill]] %s3325_s0 }
   0x2   :  { %15 = vsyncpa [#allocation5], 0 }
   0x3   :  { %17 = vsyncpa [#allocation5 + $0x1], 0  ;;  %s2776_s13 = smov 0   ;;  %s2778_s14 = smov 0  }
   0x4   :  { %s2780_s15 = smov 0   ;;  %s2782_s16 = smov 0  }
   0x5   :  { %s2784_s17 = smov 0   ;;  %s2786_s18 = smov 0  }
   0x6 LB: > { %s2096_s19 = sadd.s32 4294967295, %s2709_s18   ;;  %s2097_s20 = sadd.s32 4294967294, %s2709_s18   ;;  %s2709_s18 = sphi %s2786_s18, %s23_s18   ;;  %s2705_s17 = sphi %s2784_s17, %s3344_s17   ;;  %s2701_s16 = sphi %s2782_s16, %s3343_s16   ;;  %s2697_s15 = sphi %s2780_s15, %s3342_s15   ;;  %s2693_s14 = sphi %s2778_s14, %s3341_s14   ;;  %s2689_s13 = sphi %s2776_s13, %s3340_s13  }
   0x7   : > { %s35_s21 = sadd.s32 1, %s2705_s17  ;;  %s266_s22 = sadd.s32 1, %s2697_s15 }
   0x8   : > { %p37_p0 = scmp.ge.s32.totalorder %s35_s21, 2  ;;  %p276_p1 = scmp.ne.s32.totalorder %s2697_s15, %s2693_s14 }
   0x9   : > { %p277_p2 = scmp.eq.s32.totalorder %s2096_s19, 1  ;;  %p282_p3 = scmp.ne.s32.totalorder %s2693_s14, %s2689_s13 }
   0xa   : > { %s3346_s21 = smov (%p37_p0, %s35_s21), 0  ;;  %p283_p5 = scmp.eq.s32.totalorder %s2097_s20, 1 }
   0xb   : > { %p2816_p4 = por %p277_p2, %p276_p1  ;;  %s261_s24 = ssub.s32 %s2705_s17, %s3346_s21 }
   0xc   : > { %p2100_p6 = scmp.ge.s32.totalorder %s2709_s18, 1  ;;  %p264_p7 = scmp.eq.s32.totalorder %s261_s24, 0 }
   0xd   : > { %p2823_p8 = por %p283_p5, %p282_p3  ;;  %p346_p9 = scmp.lt.s32.totalorder %s2709_s18, 3 }
   0xe   : > { %s2829_s26 = scalar_select %p264_p7, %s2697_s15, %s266_s22  }
   0xf   : > { %p347_p10 = pnand %p2100_p6, %p346_p9 }
  0x10   : > { %p394_p11 = scmp.lt.s32.totalorder (!%p347_p10), %s2701_s16, 1  ;;  %s3339_s0 = sld [smem:[#allocation7_spill]] (!%p347_p10) }
  0x11   : > { %350 = sbr.rel (%p347_p10) target bundleno = 3194 (0xc7a), region = 60  ;;  %s2715_s24 = smov (!%p347_p10), 120  }
  0x12   : > { %s2716_s30 = smov (!%p347_p10), 112  }
  0x16   : > { %v2560_v0 = vld [vmem:[%s3331_s6] sm:$0xff]   ;;  %s2836_s29 = scalar_select %p394_p11, %s2701_s16, 1  ;;  %vm508_vm0 = vcmask 130048   ;;  %v2711_v2 = vmov 0.0   ;;  %v2712_v5 = vmov 0   ;;  %v435_v8 = vld [vmem:[%s3330_s5 + $0x8] sm:$0xff] }
  0x17   : > { %2327 = vmatprep.subr.bf16.mxu1 %v2560_v0  ;;  %v2565_v1 = vld [vmem:[%s3329_s4] sm:$0xff]   ;;  %2553 = vset.pattern.permute.xlu0 %v2712_v5  ;;  %v2564_v9 = vld [vmem:[%s3327_s2 + $0x8] sm:$0xff]   ;;  %vm2713_vm1 = vmmov 0   ;;  %vm1026_vm2 = vcmask 261120   ;;  %vm784_vm3 = vcmask 60416   ;;  %vm1083_vm4 = vcmask 1043456  }
  0x18   : > { %s2200_s12 = sshll.u32 %s2836_s29, 6  ;;  %2328 = vmatpush3.bf16.msra.mxu1 %v2560_v0  ;;  %2323 = vmatprep.mubr.msk.bf16.mxu0 %vm508_vm0, %v2565_v1  ;;  %v434_v3 = vld [vmem:[%s3330_s5] sm:$0xff]  ;;  %s2199_s11 = sshll.u32 %s2836_s29, 3  ;;  %v2566_v25 = vld [vmem:[%s3329_s4 + $0x8] sm:$0xff]   ;;  %vm1079_vm5 = vcmask 64512  }
  0x19   : > { %s2845_s22 = scalar_lea.vmem %s3326_s1, %s2200_s12  ;;  %2345 = vmatprep.subr.bf16.mxu1 %v2711_v2  ;;  %2554 = vset.pattern.permute.xlu1 %v2712_v5  ;;  %s2870_s27 = scalar_lea.vmem %s3339_s0, %s2199_s11  ;;  %v2567_v15 = vld [vmem:[%s3327_s2] sm:$0xff]  }
  0x1a   : > { %v2555_v4 = vld [vmem:[%s2845_s22 + $0x38] sm:$0xff]   ;;  %v2556_v6 = vld [vmem:[%s2845_s22 + $0x30] sm:$0xff]   ;;  %440 = vperm.xlu0 %2553, %v434_v3   ;;  %v2557_v10 = vld [vmem:[%s2845_s22 + $0x28] sm:$0xff]   ;;  %s2718_s12 = smov [#allocation4]  }
  0x1b   : > { %2481 = vmatprep.subr.msk.bf16.mxu0 %vm508_vm0, %v2555_v4  ;;  %v537_v7 = vsel %vm508_vm0, %v2555_v4, 0  ;;  %v2562_v11 = vld [vmem:[%s2845_s22] sm:$0xff]   ;;  %v2563_v12 = vld [vmem:[%s2845_s22 + $0x8] sm:$0xff]   ;;  %v534_v13 = vsel %vm508_vm0, %v2556_v6, 0  ;;  %v2561_v14 = vld [vmem:[%s2845_s22 + $0x10] sm:$0xff]   ;;  %v531_v17 = vsel %vm508_vm0, %v2557_v10, 0 }
  0x1c   : > { %2308 = vmatpush3.bf16.xpose.msra.mxu0 %v537_v7  ;;  %2329 = vmatprep.mubr.msk.bf16.mxu1 %vm508_vm0, %v2562_v11  ;;  %v2559_v16 = vld [vmem:[%s2845_s22 + $0x18] sm:$0xff]   ;;  %v2558_v18 = vld [vmem:[%s2845_s22 + $0x20] sm:$0xff]   ;;  %v522_v22 = vsel %vm508_vm0, %v2561_v14, 0  ;;  %v519_v23 = vsel %vm508_vm0, %v2563_v12, 0  ;;  %v516_v24 = vsel %vm508_vm0, %v2562_v11, 0  ;;  %s2637_s19 = sshll.u32 %s2718_s12, 4  ;;  %s2638_s19 = int_to_ptr.vmem [resolvable:$false] %s2637_s19 }
  0x1d   : > { %2482 = vmatprep.subr.msk.bf16.mxu0 %vm508_vm0, %v2556_v6  ;;  %2330 = vmatmul.mubr.msk.bf16.vlgmr.msra.gmra.mxu1 %vm508_vm0, %v2563_v12  ;;  %v528_v19 = vsel %vm508_vm0, %v2558_v18, 0  ;;  %v525_v20 = vsel %vm508_vm0, %v2559_v16, 0  ;;  %v2568_v21 = vld [vmem:[%s2870_s27] sm:$0xff]   ;;  %s2221_s27 = sshll.u32 %s2701_s16, 8 }
  0x1e   : > { %445 = vperm.xlu0 %2553, %v435_v8   ;;  %2346 = vmatpush3.bf16.msra.mxu1 %v2564_v9  ;;  %v2122_v26 = vld [vmem:[%s3332_s7] ss:$0 sm:$0xff]  ;;  %s3275_s22 = scalar_lea.hbm %s3335_s10, %s2221_s27  ;;  %s2639_s27 = scalar_lea.vmem %s2638_s19, 512 }
  0x1f   : > { %2333 = vmatprep.mubr.msk.bf16.mxu1 %vm508_vm0, %v2561_v14  ;;  %2347 = vmatprep.subr.bf16.mxu1 %v2711_v2 }
  0x22   : > { %2348 = vmatpush3.bf16.msra.mxu1 %v2567_v15 }
  0x23   : > { %2353 = vmatprep.subr.bf16.mxu1 %v2711_v2 }
  0x24   : > { %2310 = vmatpush3.bf16.xpose.msra.mxu0 %v534_v13 }
  0x25   : > { %2483 = vmatprep.subr.msk.bf16.mxu0 %vm508_vm0, %v2557_v10  ;;  %2334 = vmatmul.mubr.msk.bf16.gmra.mxu1 %vm508_vm0, %v2559_v16 }
  0x26   : > { %2337 = vmatprep.mubr.msk.bf16.mxu1 %vm508_vm0, %v2558_v18 }
  0x2c   : > { %2312 = vmatpush3.bf16.xpose.msra.mxu0 %v531_v17 }
  0x2d   : > { %2484 = vmatprep.subr.msk.bf16.mxu0 %vm508_vm0, %v2558_v18  ;;  %2338 = vmatmul.mubr.msk.bf16.gmra.mxu1 %vm508_vm0, %v2557_v10 }
  0x2e   : > { %2341 = vmatprep.mubr.msk.bf16.mxu1 %vm508_vm0, %v2556_v6 }
  0x34   : > { %2314 = vmatpush3.bf16.xpose.msra.mxu0 %v528_v19 }
  0x35   : > { %2485 = vmatprep.subr.msk.bf16.mxu0 %vm508_vm0, %v2559_v16  ;;  %2342 = vmatmul.mubr.msk.bf16.gmra.mxu1 %vm508_vm0, %v2555_v4 }
  0x36   : > { %2349 = vmatprep.mubr.msk.bf16.mxu1 %vm2713_vm1, %v2711_v2 }
  0x3c   : > { %2316 = vmatpush3.bf16.xpose.msra.mxu0 %v525_v20 }
  0x3d   : > { %2486 = vmatprep.subr.msk.bf16.mxu0 %vm508_vm0, %v2561_v14  ;;  %2350 = vmatmul.mubr.msk.bf16.vlgmr.msra.gmra.mxu1 %vm1026_vm2, %v2568_v21 }
  0x3e   : > { %2355 = vmatprep.mubr.msk.bf16.mxu1 %vm2713_vm1, %v2711_v2 }
  0x44   : > { %2318 = vmatpush3.bf16.xpose.msra.mxu0 %v522_v22 }
  0x45   : > { %2487 = vmatprep.subr.msk.bf16.mxu0 %vm508_vm0, %v2563_v12 }
  0x4c   : > { %2320 = vmatpush3.bf16.xpose.msra.mxu0 %v519_v23 }
  0x4d   : > { %2488 = vmatprep.subr.msk.bf16.mxu0 %vm508_vm0, %v2562_v11 }
  0x54   : > { %2322 = vmatpush3.bf16.xpose.msra.mxu0 %v516_v24 }
  0x55   : > { %2385 = vmatprep.subr.bf16.mxu0 %v2711_v2 }
  0x5b   : > { %2324 = vmatmul.mubr.msk.bf16.vlgmr.msra.gmra.mxu0 %vm508_vm0, %v2566_v25  ;;  %v2148_v25 = vld [vmem:[%s3328_s3] ss:$0 sm:$0xff] }
  0x5c   : > { %2401 = vmatprep.mubr.msk.bf16.mxu0 %vm2713_vm1, %v2711_v2 }
  0x95   : > { %v441_v16 = vpop.permute.xlu0 %440 }
  0x99   : > { %v446_v20 = vpop.permute.xlu0 %445 }
  0xdd   : > { %v2331_v27 = vpop.f32.mrf.mxu1 }
  0xde   : > { %v666_v28 = vadd.f32 %v2331_v27, %v2122_v26 }
  0xdf   : > { %v657_v29 = vpop.f32.mrf.mxu1 }
  0xe0   : > { %v2917_v30 = vpack.c.bf16 %v666_v28, %v666_v28  ;;  %v658_v31 = vadd.f32 %v2122_v26, %v657_v29 }
  0xe1   : > { %v2332_v32 = vpop.f32.mrf.mxu1 }
  0xe2   : > { %787 = vst.msk [vmem:[#allocation3 + $0x8] sm:$0xf] %vm784_vm3, %v2917_v30  ;;  %v2921_v33 = vpack.c.bf16 %v658_v31, %v658_v31  ;;  %v669_v34 = vadd.f32 %v2332_v32, %v2122_v26 }
  0xe3   : > { %v660_v35 = vpop.f32.mrf.mxu1 }
  0xe4   : > { %785 = vst.msk [vmem:[#allocation3] sm:$0xf] %vm784_vm3, %v2921_v33  ;;  %v2925_v36 = vpack.c.bf16 %v669_v34, %v669_v34  ;;  %v661_v37 = vadd.f32 %v2122_v26, %v660_v35 }
  0xe5   : > { %v2335_v38 = vpop.f32.mrf.mxu1 }
  0xe6   : > { %788 = vst.msk [vmem:[#allocation3 + $0xc] sm:$0xf] %vm784_vm3, %v2925_v36  ;;  %v2929_v39 = vpack.c.bf16 %v661_v37, %v661_v37  ;;  %v682_v40 = vadd.f32 %v2335_v38, %v2122_v26 }
  0xe7   : > { %v673_v41 = vpop.f32.mrf.mxu1 }
  0xe8   : > { %786 = vst.msk [vmem:[#allocation3 + $0x4] sm:$0xf] %vm784_vm3, %v2929_v39  ;;  %v2933_v42 = vpack.c.bf16 %v682_v40, %v682_v40  ;;  %v674_v43 = vadd.f32 %v2122_v26, %v673_v41 }
  0xe9   : > { %v2336_v44 = vpop.f32.mrf.mxu1 }
  0xea   : > { %791 = vst.msk [vmem:[#allocation3 + $0x18] sm:$0xf] %vm784_vm3, %v2933_v42  ;;  %v2937_v45 = vpack.c.bf16 %v674_v43, %v674_v43  ;;  %v685_v46 = vadd.f32 %v2336_v44, %v2122_v26 }
  0xeb   : > { %v676_v47 = vpop.f32.mrf.mxu1 }
  0xec   : > { %789 = vst.msk [vmem:[#allocation3 + $0x10] sm:$0xf] %vm784_vm3, %v2937_v45  ;;  %v2941_v48 = vpack.c.bf16 %v685_v46, %v685_v46  ;;  %v677_v49 = vadd.f32 %v2122_v26, %v676_v47  ;;  %v1074_v47 = vlaneseq }
  0xed   : > { %v2339_v50 = vpop.f32.mrf.mxu1  ;;  %v2575_v44 = vld [vmem:[#allocation3 + $0x8] sm:$0xff]  }
  0xee   : > { %792 = vst.msk [vmem:[#allocation3 + $0x1c] sm:$0xf] %vm784_vm3, %v2941_v48  ;;  %v2945_v51 = vpack.c.bf16 %v677_v49, %v677_v49  ;;  %v698_v52 = vadd.f32 %v2339_v50, %v2122_v26  ;;  %v1075_v49 = vand.u32 127, %v1074_v47  ;;  %v2714_v50 = vmov -1e+30  }
  0xef   : > { %v689_v53 = vpop.f32.mrf.mxu1  ;;  %v2576_v46 = vld [vmem:[#allocation3] sm:$0xff]  }
  0xf0   : > { %790 = vst.msk [vmem:[#allocation3 + $0x14] sm:$0xf] %vm784_vm3, %v2945_v51  ;;  %v2949_v54 = vpack.c.bf16 %v698_v52, %v698_v52  ;;  %v690_v55 = vadd.f32 %v2122_v26, %v689_v53  ;;  %vm1076_vm6 = vcmp.lt.s32.totalorder %v1075_v49, 8 }
  0xf1   : > { %v2340_v56 = vpop.f32.mrf.mxu1  ;;  %v3004_v52 = vsel %vm1076_vm6, 0.0, %v2714_v50 }
  0xf2   : > { %795 = vst.msk [vmem:[#allocation3 + $0x28] sm:$0xf] %vm784_vm3, %v2949_v54  ;;  %v2953_v57 = vpack.c.bf16 %v690_v55, %v690_v55  ;;  %v701_v58 = vadd.f32 %v2340_v56, %v2122_v26 }
  0xf3   : > { %v692_v59 = vpop.f32.mrf.mxu1 }
  0xf4   : > { %793 = vst.msk [vmem:[#allocation3 + $0x20] sm:$0xf] %vm784_vm3, %v2953_v57  ;;  %v2957_v60 = vpack.c.bf16 %v701_v58, %v701_v58  ;;  %v693_v61 = vadd.f32 %v2122_v26, %v692_v59 }
  0xf5   : > { %v2343_v62 = vpop.f32.mrf.mxu1  ;;  %v2573_v41 = vld [vmem:[#allocation3 + $0x18] sm:$0xff]  }
  0xf6   : > { %796 = vst.msk [vmem:[#allocation3 + $0x2c] sm:$0xf] %vm784_vm3, %v2957_v60  ;;  %v2961_v63 = vpack.c.bf16 %v693_v61, %v693_v61  ;;  %v714_v0 = vadd.f32 %v2343_v62, %v2122_v26 }
  0xf7   : > { %v705_v1 = vpop.f32.mrf.mxu1  ;;  %v2574_v43 = vld [vmem:[#allocation3 + $0x10] sm:$0xff]  }
  0xf8   : > { %794 = vst.msk [vmem:[#allocation3 + $0x24] sm:$0xf] %vm784_vm3, %v2961_v63  ;;  %v2965_v3 = vpack.c.bf16 %v714_v0, %v714_v0  ;;  %v706_v4 = vadd.f32 %v2122_v26, %v705_v1 }
  0xf9   : > { %v2344_v5 = vpop.f32.mrf.mxu1 }
  0xfa   : > { %799 = vst.msk [vmem:[#allocation3 + $0x38] sm:$0xf] %vm784_vm3, %v2965_v3  ;;  %v2969_v6 = vpack.c.bf16 %v706_v4, %v706_v4  ;;  %v717_v7 = vadd.f32 %v2344_v5, %v2122_v26 }
  0xfb   : > { %v708_v8 = vpop.f32.mrf.mxu1 }
  0xfc   : > { %797 = vst.msk [vmem:[#allocation3 + $0x30] sm:$0xf] %vm784_vm3, %v2969_v6  ;;  %v2973_v9 = vpack.c.bf16 %v717_v7, %v717_v7  ;;  %v709_v10 = vadd.f32 %v2122_v26, %v708_v8 }
  0xfd   : > { %v1064_v11 = vpop.f32.mrf.mxu1  ;;  %v2571_v38 = vld [vmem:[#allocation3 + $0x28] sm:$0xff]  }
  0xfe   : > { %800 = vst.msk [vmem:[#allocation3 + $0x3c] sm:$0xf] %vm784_vm3, %v2973_v9  ;;  %v2977_v12 = vpack.c.bf16 %v709_v10, %v709_v10  ;;  %v1065_v26 = vadd.f32 %v2148_v25, %v1064_v11 }
  0xff   : > { %v2351_v13 = vpop.f32.mrf.mxu1  ;;  %v2572_v40 = vld [vmem:[#allocation3 + $0x20] sm:$0xff]  }
 0x100   : > { %798 = vst.msk [vmem:[#allocation3 + $0x34] sm:$0xf] %vm784_vm3, %v2977_v12  ;;  %v1071_v28 = vmul.f32 0.35355338, %v1065_v26 }
 0x101   : > { %v1067_v14 = vpop.f32.mrf.mxu1 }
 0x102   : > { %v1068_v27 = vadd.f32 %v2148_v25, %v1067_v14 }
 0x103   : > { %v2352_v15 = vpop.f32.mrf.mxu1 }
 0x104   : > { %v1072_v29 = vmul.f32 0.35355338, %v1068_v27 }
 0x105   : > { %v2569_v35 = vld [vmem:[#allocation3 + $0x38] sm:$0xff]  }
 0x106   : > { %v2989_v34 = vpack.c.bf16 %v1072_v29, %v1071_v28 }
 0x107   : > { %v2570_v37 = vld [vmem:[#allocation3 + $0x30] sm:$0xff]  }
 0x11b   : > { %v2981_v17 = vpop.f32.mrf.mxu0 }
 0x11d   : > { %v573_v18 = vpop.f32.mrf.mxu0 }
 0x11e   : > { %v574_v22 = vadd.f32 %v573_v18, %v441_v16 }
 0x11f   : > { %v2983_v19 = vpop.f32.mrf.mxu0 }
 0x121   : > { %v576_v21 = vpop.f32.mrf.mxu0 }
 0x122   : > { %v577_v23 = vadd.f32 %v576_v21, %v446_v20 }
 0x124   : > { %v2225_v24 = vpack.c.bf16 %v577_v23, %v574_v22 }
 0x126   : > { %2226 = vst [vmem:[#allocation2] sm:$0xff] %v2225_v24  }
 0x12d   : > { %v1078_v31 = vld [vmem:[#allocation2] sm:$0xf]  ;;  %v1254_v23 = vld [vmem:[#allocation2 + $0x4] sm:$0xf] }
 0x12e   : > { %v1085_v32 = vsel %vm1083_vm4, %v1078_v31, 0  ;;  %v1262_v25 = vsel %vm1083_vm4, %v1254_v23, 0 }
 0x12f   : > { %2354 = vmatpush3.bf16.msra.mxu1 %v1085_v32 }
 0x130   : > { %2359 = vmatprep.subr.bf16.mxu1 %v2711_v2 }
 0x132   : > { %2356 = vmatmul.mubr.msk.bf16.vlgmr.msra.gmra.mxu1 %vm1079_vm5, %v2989_v34 }
 0x133   : > { %2360 = vmatpush3.bf16.msra.mxu1 %v2569_v35  ;;  %2375 = vmatprep.mubr.msk.bf16.mxu1 %vm2713_vm1, %v2711_v2 }
 0x134   : > { %2361 = vmatprep.subr.bf16.mxu1 %v2711_v2 }
 0x137   : > { %2362 = vmatpush3.bf16.msra.mxu1 %v2570_v37 }
 0x138   : > { %2363 = vmatprep.subr.bf16.mxu1 %v2711_v2 }
 0x13b   : > { %2364 = vmatpush3.bf16.msra.mxu1 %v2571_v38 }
 0x13c   : > { %2365 = vmatprep.subr.bf16.mxu1 %v2711_v2 }
 0x13f   : > { %2366 = vmatpush3.bf16.msra.mxu1 %v2572_v40 }
 0x140   : > { %2367 = vmatprep.subr.bf16.mxu1 %v2711_v2 }
 0x143   : > { %2368 = vmatpush3.bf16.msra.mxu1 %v2573_v41 }
 0x144   : > { %2369 = vmatprep.subr.bf16.mxu1 %v2711_v2 }
 0x147   : > { %2370 = vmatpush3.bf16.msra.mxu1 %v2574_v43 }
 0x148   : > { %2371 = vmatprep.subr.bf16.mxu1 %v2711_v2 }
 0x14b   : > { %2372 = vmatpush3.bf16.msra.mxu1 %v2575_v44 }
 0x14c   : > { %2373 = vmatprep.subr.bf16.mxu1 %v2711_v2 }
 0x14f   : > { %2374 = vmatpush3.bf16.msra.mxu1 %v2576_v46 }
 0x150   : > { %2379 = vmatprep.subr.bf16.mxu1 %v2711_v2 }
 0x1f2   : > { %v1121_v53 = vpop.f32.mrf.mxu1 }
 0x1f3   : > { %v1122_v55 = vadd.f32 %v1121_v53, %v3004_v52 }
 0x1f4   : > { %v2357_v56 = vpop.f32.mrf.mxu1 }
 0x1f5   : > { %1128 = vmax.xlane.f32.xlu1 %v1122_v55 }
 0x1f6   : > { %v1124_v58 = vpop.f32.mrf.mxu1 }
 0x1f7   : > { %v1125_v59 = vadd.f32 %v1124_v58, %v3004_v52 }
 0x1f8   : > { %v2358_v61 = vpop.f32.mrf.mxu1 }
 0x1f9   : > { %1130 = vmax.xlane.f32.xlu1 %v1125_v59 }
 0x27e   : > { %v1129_v62 = vpop.xlane.xlu1 %1128 }
 0x27f   : > { %v1132_v0 = vsub.f32 %v1122_v55, %v1129_v62 }
 0x281   : > { %v1134_v1 = vmul.f32 1.442695, %v1132_v0 }
 0x282   : > { %v1131_v4 = vpop.xlane.xlu1 %1130 }
 0x283   : > { %2601 = vpow2.f32 %v1134_v1  ;;  %v1133_v5 = vsub.f32 %v1125_v59, %v1131_v4 }
 0x285   : > { %v1136_v7 = vmul.f32 1.442695, %v1133_v5 }
 0x287   : > { %2603 = vpow2.f32 %v1136_v7 }
 0x290   : > { %v2602_v8 = vpop.eup %2601 }
 0x291   : > { %1138 = vadd.xlane.f32.xlu0 %v2602_v8 }
 0x294   : > { %v2604_v10 = vpop.eup %2603 }
 0x295   : > { %1140 = vadd.xlane.f32.xlu1 %v2604_v10 }
 0x2a6   : > { %1256 = vrot.lane.b32.xlu1 %v2989_v34, %s2715_s24 }
 0x2a7   : > { %829 = vrot.lane.b32.xlu0 %v2965_v3, %s2715_s24 }
 0x2ab   : > { %831 = vrot.lane.b32.xlu0 %v2973_v9, %s2715_s24 }
 0x31a   : > { %v1139_v11 = vpop.xlane.xlu0 %1138 }
 0x31b   : > { %2605 = vrcp.f32 %v1139_v11 }
 0x31e   : > { %v830_v13 = vpop.permute.xlu0 %829  ;;  %v1141_v14 = vpop.xlane.xlu1 %1140 }
 0x31f   : > { %864 = vst.msk [vmem:[#allocation3 + $0x78] sm:$0xf] %vm784_vm3, %v830_v13  ;;  %2607 = vrcp.f32 %v1141_v14 }
 0x322   : > { %v832_v15 = vpop.permute.xlu0 %831  ;;  %v1257_v26 = vpop.permute.xlu1 %1256 }
 0x323   : > { %865 = vst.msk [vmem:[#allocation3 + $0x7c] sm:$0xf] %vm784_vm3, %v832_v15 }
 0x328   : > { %v2606_v16 = vpop.eup %2605 }
 0x329   : > { %v1144_v21 = vmul.f32 %v2606_v16, %v2602_v8 }
 0x32a   : > { %v2577_v18 = vld [vmem:[#allocation3 + $0x78] sm:$0xff]  }
 0x32b   : > { %2386 = vmatpush3.bf16.msra.mxu0 %v2577_v18 }
 0x32c   : > { %v2608_v20 = vpop.eup %2607  ;;  %2387 = vmatprep.subr.bf16.mxu0 %v2711_v2 }
 0x32d   : > { %v1145_v22 = vmul.f32 %v2608_v20, %v2604_v10 }
 0x32f   : > { %v1146_v24 = vpack.c.bf16 %v1145_v22, %v1144_v21  ;;  %v437_v21 = vld [vmem:[%s3330_s5 + $0x18] sm:$0xff]  ;;  %v436_v22 = vld [vmem:[%s3330_s5 + $0x10] sm:$0xff] }
 0x331   : > { %2376 = vmatmul.mubr.bf16.vlgmr.msra.gmra.mxu1 %v1146_v24 }
 0x332   : > { %2380 = vmatpush3.bf16.msra.mxu1 %v1262_v25  ;;  %2381 = vmatprep.mubr.msk.bf16.mxu1 %vm2713_vm1, %v2711_v2 }
 0x333   : > { %2405 = vmatprep.subr.bf16.mxu1 %v2711_v2 }
 0x339   : > { %2382 = vmatmul.mubr.msk.bf16.vlgmr.msra.gmra.mxu1 %vm1079_vm5, %v1257_v26 }
 0x33a   : > { %2407 = vmatprep.mubr.msk.bf16.mxu1 %vm2713_vm1, %v2711_v2 }
 0x3f1   : > { %v3024_v27 = vpop.f32.mrf.mxu1 }
 0x3f3   : > { %v2377_v28 = vpop.f32.mrf.mxu1 }
 0x3f5   : > { %v3026_v29 = vpop.f32.mrf.mxu1 }
 0x3f6   : > { %v1252_v31 = vpack.c.bf16 %v3026_v29, %v3024_v27 }
 0x3f7   : > { %v2378_v32 = vpop.f32.mrf.mxu1 }
 0x3f9   : > { %v1298_v35 = vpop.f32.mrf.mxu1 }
 0x3fa   : > { %v1299_v37 = vadd.f32 %v1298_v35, %v3004_v52 }
 0x3fb   : > { %v2383_v38 = vpop.f32.mrf.mxu1 }
 0x3fc   : > { %1305 = vmax.xlane.f32.xlu1 %v1299_v37 }
 0x3fd   : > { %v1301_v40 = vpop.f32.mrf.mxu1 }
 0x3fe   : > { %v1302_v41 = vadd.f32 %v1301_v40, %v3004_v52 }
 0x3ff   : > { %v2384_v43 = vpop.f32.mrf.mxu1 }
 0x400   : > { %1307 = vmax.xlane.f32.xlu0 %v1302_v41 }
 0x40d   : > { %825 = vrot.lane.b32.xlu1 %v2969_v6, %s2715_s24 }
 0x411   : > { %819 = vrot.lane.b32.xlu1 %v2961_v63, %s2715_s24 }
 0x415   : > { %815 = vrot.lane.b32.xlu1 %v2941_v48, %s2715_s24 }
 0x416   : > { %827 = vrot.lane.b32.xlu0 %v2977_v12, %s2715_s24 }
 0x419   : > { %811 = vrot.lane.b32.xlu1 %v2945_v51, %s2715_s24 }
 0x41a   : > { %821 = vrot.lane.b32.xlu0 %v2949_v54, %s2715_s24 }
 0x41d   : > { %807 = vrot.lane.b32.xlu1 %v2925_v36, %s2715_s24 }
 0x41e   : > { %823 = vrot.lane.b32.xlu0 %v2957_v60, %s2715_s24 }
 0x422   : > { %817 = vrot.lane.b32.xlu0 %v2953_v57, %s2715_s24 }
 0x426   : > { %813 = vrot.lane.b32.xlu0 %v2933_v42, %s2715_s24 }
 0x42a   : > { %809 = vrot.lane.b32.xlu0 %v2937_v45, %s2715_s24 }
 0x42e   : > { %805 = vrot.lane.b32.xlu0 %v2917_v30, %s2715_s24 }
 0x485   : > { %v1306_v44 = vpop.xlane.xlu1 %1305 }
 0x486   : > { %v1309_v46 = vsub.f32 %v1299_v37, %v1306_v44 }
 0x488   : > { %v1311_v47 = vmul.f32 1.442695, %v1309_v46 }
 0x489   : > { %v826_v49 = vpop.permute.xlu1 %825  ;;  %v1308_v50 = vpop.xlane.xlu0 %1307 }
 0x48a   : > { %2609 = vpow2.f32 %v1311_v47  ;;  %862 = vst.msk [vmem:[#allocation3 + $0x70] sm:$0xf] %vm784_vm3, %v826_v49  ;;  %v1310_v53 = vsub.f32 %v1302_v41, %v1308_v50 }
 0x48c   : > { %v1313_v55 = vmul.f32 1.442695, %v1310_v53  ;;  %v1253_v53 = vld [vmem:[%s3333_s8] sm:$0xf] }
 0x48d   : > { %v820_v56 = vpop.permute.xlu1 %819  ;;  %v828_v58 = vpop.permute.xlu0 %827 }
 0x48e   : > { %2611 = vpow2.f32 %v1313_v55  ;;  %859 = vst.msk [vmem:[#allocation3 + $0x64] sm:$0xf] %vm784_vm3, %v820_v56  ;;  %863 = vst.msk [vmem:[#allocation3 + $0x74] sm:$0xf] %vm784_vm3, %v828_v58  ;;  %v1483_v58 = vsel %vm1083_vm4, %v1253_v53, 0 }
 0x491   : > { %v816_v59 = vpop.permute.xlu1 %815  ;;  %v822_v61 = vpop.permute.xlu0 %821 }
 0x492   : > { %857 = vst.msk [vmem:[#allocation3 + $0x5c] sm:$0xf] %vm784_vm3, %v816_v59  ;;  %860 = vst.msk [vmem:[#allocation3 + $0x68] sm:$0xf] %vm784_vm3, %v822_v61 }
 0x495   : > { %v812_v62 = vpop.permute.xlu1 %811  ;;  %v824_v0 = vpop.permute.xlu0 %823  ;;  %v2578_v1 = vld [vmem:[#allocation3 + $0x70] sm:$0xff]  }
 0x496   : > { %855 = vst.msk [vmem:[#allocation3 + $0x54] sm:$0xf] %vm784_vm3, %v812_v62  ;;  %861 = vst.msk [vmem:[#allocation3 + $0x6c] sm:$0xf] %vm784_vm3, %v824_v0  ;;  %2388 = vmatpush3.bf16.msra.mxu0 %v2578_v1 }
 0x497   : > { %v2610_v4 = vpop.eup %2609  ;;  %2389 = vmatprep.subr.bf16.mxu0 %v2711_v2 }
 0x498   : > { %1315 = vadd.xlane.f32.xlu0 %v2610_v4 }
 0x499   : > { %v808_v5 = vpop.permute.xlu1 %807  ;;  %v818_v7 = vpop.permute.xlu0 %817 }
 0x49a   : > { %853 = vst.msk [vmem:[#allocation3 + $0x4c] sm:$0xf] %vm784_vm3, %v808_v5  ;;  %858 = vst.msk [vmem:[#allocation3 + $0x60] sm:$0xf] %vm784_vm3, %v818_v7 }
 0x49b   : > { %v2612_v8 = vpop.eup %2611 }
 0x49c   : > { %1317 = vadd.xlane.f32.xlu1 %v2612_v8 }
 0x49d   : > { %v814_v10 = vpop.permute.xlu0 %813  ;;  %v2579_v11 = vld [vmem:[#allocation3 + $0x68] sm:$0xff]  }
 0x49e   : > { %856 = vst.msk [vmem:[#allocation3 + $0x58] sm:$0xf] %vm784_vm3, %v814_v10  ;;  %2390 = vmatpush3.bf16.msra.mxu0 %v2579_v11 }
 0x49f   : > { %2391 = vmatprep.subr.bf16.mxu0 %v2711_v2 }
 0x4a1   : > { %v810_v13 = vpop.permute.xlu0 %809  ;;  %v2580_v14 = vld [vmem:[#allocation3 + $0x60] sm:$0xff]  }
 0x4a2   : > { %854 = vst.msk [vmem:[#allocation3 + $0x50] sm:$0xf] %vm784_vm3, %v810_v13  ;;  %2392 = vmatpush3.bf16.msra.mxu0 %v2580_v14 }
 0x4a3   : > { %2393 = vmatprep.subr.bf16.mxu0 %v2711_v2 }
 0x4a5   : > { %v806_v15 = vpop.permute.xlu0 %805  ;;  %v2581_v16 = vld [vmem:[#allocation3 + $0x58] sm:$0xff]  }
 0x4a6   : > { %852 = vst.msk [vmem:[#allocation3 + $0x48] sm:$0xf] %vm784_vm3, %v806_v15  ;;  %2394 = vmatpush3.bf16.msra.mxu0 %v2581_v16 }
 0x4a7   : > { %2395 = vmatprep.subr.bf16.mxu0 %v2711_v2 }
 0x4a9   : > { %v2582_v18 = vld [vmem:[#allocation3 + $0x50] sm:$0xff]  }
 0x4aa   : > { %2396 = vmatpush3.bf16.msra.mxu0 %v2582_v18 }
 0x4ab   : > { %2397 = vmatprep.subr.bf16.mxu0 %v2711_v2 }
 0x4ad   : > { %803 = vrot.lane.b32.xlu1 %v2929_v39, %s2715_s24  ;;  %v2583_v20 = vld [vmem:[#allocation3 + $0x48] sm:$0xff]  }
 0x4ae   : > { %801 = vrot.lane.b32.xlu0 %v2921_v33, %s2715_s24  ;;  %2398 = vmatpush3.bf16.msra.mxu0 %v2583_v20  ;;  %s2717_s24 = smov 104  }
 0x4af   : > { %2399 = vmatprep.subr.bf16.mxu0 %v2711_v2 }
 0x4b1   : > { %455 = vperm.xlu1 %2554, %v437_v21  }
 0x4b2   : > { %450 = vperm.xlu0 %2553, %v436_v22  }
 0x4b6   : > { %1527 = vrot.lane.b32.xlu0 %v2989_v34, %s2716_s30 }
 0x521   : > { %v1316_v23 = vpop.xlane.xlu0 %1315 }
 0x522   : > { %2613 = vrcp.f32 %v1316_v23 }
 0x525   : > { %v1318_v24 = vpop.xlane.xlu1 %1317  ;;  %v802_v25 = vpop.permute.xlu0 %801 }
 0x526   : > { %2615 = vrcp.f32 %v1318_v24  ;;  %850 = vst.msk [vmem:[#allocation3 + $0x40] sm:$0xf] %vm784_vm3, %v802_v25 }
 0x529   : > { %v804_v26 = vpop.permute.xlu1 %803 }
 0x52a   : > { %851 = vst.msk [vmem:[#allocation3 + $0x44] sm:$0xf] %vm784_vm3, %v804_v26 }
 0x52d   : > { %v456_v28 = vpop.permute.xlu1 %455  ;;  %v451_v32 = vpop.permute.xlu0 %450 }
 0x52e   : > { %v585_v35 = vadd.f32 %v2983_v19, %v456_v28  ;;  %v582_v37 = vadd.f32 %v2981_v17, %v451_v32  ;;  %v1431_v19 = vld [vmem:[%s3333_s8 + $0x4] sm:$0xf] }
 0x52f   : > { %v2614_v40 = vpop.eup %2613  ;;  %v1436_v17 = vsel %vm1083_vm4, %v1431_v19, 0 }
 0x530   : > { %v2230_v38 = vpack.c.bf16 %v585_v35, %v582_v37  ;;  %v1321_v44 = vmul.f32 %v2614_v40, %v2610_v4  ;;  %2406 = vmatpush3.bf16.msra.mxu1 %v1436_v17 }
 0x531   : > { %v2584_v41 = vld [vmem:[#allocation3 + $0x40] sm:$0xff]   ;;  %2411 = vmatprep.subr.bf16.mxu1 %v2711_v2  ;;  %v1528_v0 = vpop.permute.xlu0 %1527 }
 0x532   : > { %2232 = vst [vmem:[#allocation2 + $0x8] sm:$0xff] %v2230_v38   ;;  %2400 = vmatpush3.bf16.msra.mxu0 %v2584_v41 }
 0x533   : > { %v2616_v43 = vpop.eup %2615  ;;  %2443 = vmatprep.subr.bf16.mxu0 %v2711_v2 }
 0x534   : > { %v1322_v46 = vmul.f32 %v2616_v43, %v2612_v8 }
 0x536   : > { %v1323_v47 = vpack.c.bf16 %v1322_v46, %v1321_v44 }
 0x538   : > { %2402 = vmatmul.mubr.bf16.vlgmr.msra.gmra.mxu0 %v1323_v47 }
 0x539   : > { %2445 = vmatprep.mubr.msk.bf16.mxu0 %vm2713_vm1, %v2711_v2  ;;  %v1526_v61 = vld [vmem:[#allocation2 + $0x8] sm:$0xf] }
 0x53a   : > { %v1533_v62 = vsel %vm1083_vm4, %v1526_v61, 0 }
 0x5f8   : > { %v1423_v49 = vpop.f32.mrf.mxu0 }
 0x5fa   : > { %v2403_v50 = vpop.f32.mrf.mxu0 }
 0x5fc   : > { %v1426_v55 = vpop.f32.mrf.mxu0 }
 0x5fd   : > { %v1430_v56 = vpack.c.bf16 %v1426_v55, %v1423_v49 }
 0x5fe   : > { %v2404_v59 = vpop.f32.mrf.mxu0 }
 0x5ff   : > { %2408 = vmatmul.mubr.msk.bf16.vlgmr.msra.gmra.mxu1 %vm1079_vm5, %v1430_v56 }
 0x600   : > { %2412 = vmatpush3.bf16.msra.mxu1 %v1483_v58  ;;  %2413 = vmatprep.mubr.msk.bf16.mxu1 %vm2713_vm1, %v2711_v2 }
 0x601   : > { %2417 = vmatprep.subr.bf16.mxu1 %v2711_v2 }
 0x607   : > { %2414 = vmatmul.mubr.msk.bf16.vlgmr.msra.gmra.mxu1 %vm1079_vm5, %v1252_v31 }
 0x608   : > { %2418 = vmatpush3.bf16.msra.mxu1 %v1533_v62  ;;  %2419 = vmatprep.mubr.msk.bf16.mxu1 %vm2713_vm1, %v2711_v2 }
 0x609   : > { %2423 = vmatprep.subr.bf16.mxu1 %v2711_v2 }
 0x60f   : > { %2420 = vmatmul.mubr.msk.bf16.vlgmr.msra.gmra.mxu1 %vm1079_vm5, %v1528_v0 }
 0x610   : > { %2439 = vmatprep.mubr.msk.bf16.mxu1 %vm2713_vm1, %v2711_v2 }
 0x6bf   : > { %v1472_v1 = vpop.f32.mrf.mxu1 }
 0x6c1   : > { %v2409_v4 = vpop.f32.mrf.mxu1 }
 0x6c3   : > { %v1475_v5 = vpop.f32.mrf.mxu1 }
 0x6c5   : > { %v2410_v27 = vpop.f32.mrf.mxu1 }
 0x6c7   : > { %v1519_v29 = vpop.f32.mrf.mxu1 }
 0x6c8   : > { %v3117_v31 = vadd.f32 %v1519_v29, %v1472_v1 }
 0x6c9   : > { %v2415_v7 = vpop.f32.mrf.mxu1 }
 0x6cb   : > { %v1522_v8 = vpop.f32.mrf.mxu1 }
 0x6cc   : > { %v3119_v10 = vadd.f32 %v1522_v8, %v1475_v5 }
 0x6cd   : > { %v2416_v11 = vpop.f32.mrf.mxu1 }
 0x6cf   : > { %v1569_v13 = vpop.f32.mrf.mxu1 }
 0x6d0   : > { %v1570_v14 = vadd.f32 %v1569_v13, %v3004_v52 }
 0x6d1   : > { %v2421_v15 = vpop.f32.mrf.mxu1 }
 0x6d2   : > { %1576 = vmax.xlane.f32.xlu1 %v1570_v14  ;;  %v1702_v15 = vld [vmem:[%s3333_s8 + $0x8] sm:$0xf] }
 0x6d3   : > { %v1572_v16 = vpop.f32.mrf.mxu1 }
 0x6d4   : > { %v1573_v18 = vadd.f32 %v1572_v16, %v3004_v52  ;;  %v1707_v16 = vsel %vm1083_vm4, %v1702_v15, 0 }
 0x6d5   : > { %v2422_v20 = vpop.f32.mrf.mxu1  ;;  %2444 = vmatpush3.bf16.msra.mxu0 %v1707_v16 }
 0x6d6   : > { %1578 = vmax.xlane.f32.xlu0 %v1573_v18  ;;  %2449 = vmatprep.subr.bf16.mxu0 %v2711_v2 }
 0x6e3   : > { %896 = vrot.lane.b32.xlu1 %v2973_v9, %s2716_s30 }
 0x6e7   : > { %890 = vrot.lane.b32.xlu1 %v2969_v6, %s2716_s30 }
 0x6eb   : > { %886 = vrot.lane.b32.xlu1 %v2949_v54, %s2716_s30 }
 0x6ec   : > { %894 = vrot.lane.b32.xlu0 %v2965_v3, %s2716_s30 }
 0x6ef   : > { %884 = vrot.lane.b32.xlu1 %v2961_v63, %s2716_s30 }
 0x6f0   : > { %892 = vrot.lane.b32.xlu0 %v2977_v12, %s2716_s30 }
 0x6f3   : > { %878 = vrot.lane.b32.xlu1 %v2933_v42, %s2716_s30 }
 0x6f4   : > { %888 = vrot.lane.b32.xlu0 %v2957_v60, %s2716_s30 }
 0x6f7   : > { %874 = vrot.lane.b32.xlu1 %v2937_v45, %s2716_s30 }
 0x6f8   : > { %882 = vrot.lane.b32.xlu0 %v2953_v57, %s2716_s30 }
 0x6fb   : > { %870 = vrot.lane.b32.xlu1 %v2917_v30, %s2716_s30 }
 0x6fc   : > { %880 = vrot.lane.b32.xlu0 %v2941_v48, %s2716_s30 }
 0x700   : > { %876 = vrot.lane.b32.xlu0 %v2945_v51, %s2716_s30 }
 0x704   : > { %872 = vrot.lane.b32.xlu0 %v2925_v36, %s2716_s30 }
 0x75b   : > { %v1577_v21 = vpop.xlane.xlu1 %1576 }
 0x75c   : > { %v1580_v22 = vsub.f32 %v1570_v14, %v1577_v21 }
 0x75e   : > { %v1582_v23 = vmul.f32 1.442695, %v1580_v22  ;;  %v1752_v22 = vld [vmem:[#allocation2 + $0xc] sm:$0xf] }
 0x75f   : > { %v897_v24 = vpop.permute.xlu1 %896  ;;  %v1579_v25 = vpop.xlane.xlu0 %1578 }
 0x760   : > { %2617 = vpow2.f32 %v1582_v23  ;;  %930 = vst.msk [vmem:[#allocation3 + $0xbc] sm:$0xf] %vm784_vm3, %v897_v24  ;;  %v1581_v26 = vsub.f32 %v1573_v18, %v1579_v25  ;;  %v1759_v25 = vsel %vm1083_vm4, %v1752_v22, 0 }
 0x762   : > { %v1584_v28 = vmul.f32 1.442695, %v1581_v26 }
 0x763   : > { %v891_v32 = vpop.permute.xlu1 %890  ;;  %v895_v35 = vpop.permute.xlu0 %894 }
 0x764   : > { %2619 = vpow2.f32 %v1584_v28  ;;  %927 = vst.msk [vmem:[#allocation3 + $0xb0] sm:$0xf] %vm784_vm3, %v891_v32  ;;  %929 = vst.msk [vmem:[#allocation3 + $0xb8] sm:$0xf] %vm784_vm3, %v895_v35 }
 0x767   : > { %v887_v37 = vpop.permute.xlu1 %886  ;;  %v893_v38 = vpop.permute.xlu0 %892 }
 0x768   : > { %925 = vst.msk [vmem:[#allocation3 + $0xa8] sm:$0xf] %vm784_vm3, %v887_v37  ;;  %928 = vst.msk [vmem:[#allocation3 + $0xb4] sm:$0xf] %vm784_vm3, %v893_v38 }
 0x76b   : > { %v885_v40 = vpop.permute.xlu1 %884  ;;  %v889_v41 = vpop.permute.xlu0 %888  ;;  %v2585_v43 = vld [vmem:[#allocation3 + $0xb8] sm:$0xff]  }
 0x76c   : > { %924 = vst.msk [vmem:[#allocation3 + $0xa4] sm:$0xf] %vm784_vm3, %v885_v40  ;;  %926 = vst.msk [vmem:[#allocation3 + $0xac] sm:$0xf] %vm784_vm3, %v889_v41  ;;  %2424 = vmatpush3.bf16.msra.mxu1 %v2585_v43 }
 0x76d   : > { %v2618_v44 = vpop.eup %2617  ;;  %2425 = vmatprep.subr.bf16.mxu1 %v2711_v2 }
 0x76e   : > { %1586 = vadd.xlane.f32.xlu1 %v2618_v44 }
 0x76f   : > { %v879_v46 = vpop.permute.xlu1 %878  ;;  %v883_v47 = vpop.permute.xlu0 %882  ;;  %v2586_v19 = vld [vmem:[#allocation3 + $0xb0] sm:$0xff]  }
 0x770   : > { %921 = vst.msk [vmem:[#allocation3 + $0x98] sm:$0xf] %vm784_vm3, %v879_v46  ;;  %923 = vst.msk [vmem:[#allocation3 + $0xa0] sm:$0xf] %vm784_vm3, %v883_v47  ;;  %2426 = vmatpush3.bf16.msra.mxu1 %v2586_v19 }
 0x771   : > { %v2620_v17 = vpop.eup %2619  ;;  %2427 = vmatprep.subr.bf16.mxu1 %v2711_v2 }
 0x772   : > { %1588 = vadd.xlane.f32.xlu0 %v2620_v17 }
 0x773   : > { %v875_v49 = vpop.permute.xlu1 %874  ;;  %v881_v50 = vpop.permute.xlu0 %880  ;;  %v2587_v53 = vld [vmem:[#allocation3 + $0xa8] sm:$0xff]  }
 0x774   : > { %919 = vst.msk [vmem:[#allocation3 + $0x90] sm:$0xf] %vm784_vm3, %v875_v49  ;;  %922 = vst.msk [vmem:[#allocation3 + $0x9c] sm:$0xf] %vm784_vm3, %v881_v50  ;;  %2428 = vmatpush3.bf16.msra.mxu1 %v2587_v53 }
 0x775   : > { %2429 = vmatprep.subr.bf16.mxu1 %v2711_v2 }
 0x777   : > { %v871_v55 = vpop.permute.xlu1 %870  ;;  %v877_v56 = vpop.permute.xlu0 %876  ;;  %v2588_v58 = vld [vmem:[#allocation3 + $0xa0] sm:$0xff]  }
 0x778   : > { %917 = vst.msk [vmem:[#allocation3 + $0x88] sm:$0xf] %vm784_vm3, %v871_v55  ;;  %920 = vst.msk [vmem:[#allocation3 + $0x94] sm:$0xf] %vm784_vm3, %v877_v56  ;;  %2430 = vmatpush3.bf16.msra.mxu1 %v2588_v58 }
 0x779   : > { %2431 = vmatprep.subr.bf16.mxu1 %v2711_v2 }
 0x77b   : > { %v873_v59 = vpop.permute.xlu0 %872  ;;  %v2589_v61 = vld [vmem:[#allocation3 + $0x98] sm:$0xff]  }
 0x77c   : > { %918 = vst.msk [vmem:[#allocation3 + $0x8c] sm:$0xf] %vm784_vm3, %v873_v59  ;;  %2432 = vmatpush3.bf16.msra.mxu1 %v2589_v61 }
 0x77d   : > { %2433 = vmatprep.subr.bf16.mxu1 %v2711_v2 }
 0x77f   : > { %866 = vrot.lane.b32.xlu1 %v2921_v33, %s2716_s30  ;;  %v2590_v62 = vld [vmem:[#allocation3 + $0x90] sm:$0xff]  }
 0x780   : > { %2434 = vmatpush3.bf16.msra.mxu1 %v2590_v62 }
 0x781   : > { %2435 = vmatprep.subr.bf16.mxu1 %v2711_v2 }
 0x783   : > { %1753 = vrot.lane.b32.xlu1 %v2989_v34, %s2717_s24  ;;  %v2591_v0 = vld [vmem:[#allocation3 + $0x88] sm:$0xff]  }
 0x784   : > { %2436 = vmatpush3.bf16.msra.mxu1 %v2591_v0 }
 0x785   : > { %2437 = vmatprep.subr.bf16.mxu1 %v2711_v2 }
 0x787   : > { %961 = vrot.lane.b32.xlu1 %v2973_v9, %s2717_s24 }
 0x788   : > { %868 = vrot.lane.b32.xlu0 %v2929_v39, %s2716_s30  ;;  %s390_s30 = sand.u32 1, %s2693_s14  }
 0x789   : > { %s2101_s11 = sshll.u32 %s390_s30, 4  ;;  %s3280_s16 = scalar_lea.sflag [#allocation5], %s390_s30 }
 0x78a   : > { %s392_s20 = scalar_lea.vmem [#allocation4], %s2101_s11 }
 0x78b   : > { %957 = vrot.lane.b32.xlu1 %v2977_v12, %s2717_s24 }
 0x7f7   : > { %v1587_v1 = vpop.xlane.xlu1 %1586 }
 0x7f8   : > { %2621 = vrcp.f32 %v1587_v1 }
 0x7fb   : > { %v867_v4 = vpop.permute.xlu1 %866  ;;  %v1589_v5 = vpop.xlane.xlu0 %1588 }
 0x7fc   : > { %915 = vst.msk [vmem:[#allocation3 + $0x80] sm:$0xf] %vm784_vm3, %v867_v4  ;;  %2623 = vrcp.f32 %v1589_v5 }
 0x7ff   : > { %v1754_v34 = vpop.permute.xlu1 %1753  ;;  %v869_v27 = vpop.permute.xlu0 %868 }
 0x800   : > { %916 = vst.msk [vmem:[#allocation3 + $0x84] sm:$0xf] %vm784_vm3, %v869_v27 }
 0x803   : > { %v962_v29 = vpop.permute.xlu1 %961 }
 0x804   : > { %995 = vst.msk [vmem:[#allocation3 + $0xfc] sm:$0xf] %vm784_vm3, %v962_v29 }
 0x805   : > { %v2622_v9 = vpop.eup %2621 }
 0x806   : > { %v1592_v11 = vmul.f32 %v2622_v9, %v2618_v44 }
 0x807   : > { %v958_v7 = vpop.permute.xlu1 %957  ;;  %v2592_v8 = vld [vmem:[#allocation3 + $0x80] sm:$0xff]  }
 0x808   : > { %993 = vst.msk [vmem:[#allocation3 + $0xf4] sm:$0xf] %vm784_vm3, %v958_v7  ;;  %2438 = vmatpush3.bf16.msra.mxu1 %v2592_v8 }
 0x809   : > { %v2624_v12 = vpop.eup %2623  ;;  %2475 = vmatprep.subr.bf16.mxu1 %v2711_v2 }
 0x80a   : > { %v1593_v13 = vmul.f32 %v2624_v12, %v2620_v17 }
 0x80c   : > { %v1594_v14 = vpack.c.bf16 %v1593_v13, %v1592_v11 }
 0x80e   : > { %2440 = vmatmul.mubr.bf16.vlgmr.msra.gmra.mxu1 %v1594_v14 }
 0x80f   : > { %2477 = vmatprep.mubr.msk.bf16.mxu1 %vm2713_vm1, %v2711_v2 }
 0x8ce   : > { %v1694_v18 = vpop.f32.mrf.mxu1 }
 0x8d0   : > { %v2441_v20 = vpop.f32.mrf.mxu1 }
 0x8d2   : > { %v1697_v21 = vpop.f32.mrf.mxu1 }
 0x8d3   : > { %v1701_v23 = vpack.c.bf16 %v1697_v21, %v1694_v18  ;;  %v2193_v18 = vld [vmem:[%s3334_s9] ss:$0 sm:$0xff] }
 0x8d4   : > { %v2442_v24 = vpop.f32.mrf.mxu1 }
 0x8d5   : > { %2446 = vmatmul.mubr.msk.bf16.vlgmr.msra.gmra.mxu0 %vm1079_vm5, %v1701_v23 }
 0x8d6   : > { %2450 = vmatpush3.bf16.msra.mxu0 %v1759_v25  ;;  %2451 = vmatprep.mubr.msk.bf16.mxu0 %vm2713_vm1, %v2711_v2 }
 0x8d7   : > { %2455 = vmatprep.subr.bf16.mxu0 %v2711_v2 }
 0x8dd   : > { %2452 = vmatmul.mubr.msk.bf16.vlgmr.msra.gmra.mxu0 %vm1079_vm5, %v1754_v34 }
 0x8de   : > { %2471 = vmatprep.mubr.msk.bf16.mxu0 %vm2713_vm1, %v2711_v2 }
 0x995   : > { %v1743_v26 = vpop.f32.mrf.mxu0 }
 0x996   : > { %v3203_v28 = vadd.f32 %v1743_v26, %v3117_v31 }
 0x997   : > { %v2447_v32 = vpop.f32.mrf.mxu0 }
 0x999   : > { %v1746_v35 = vpop.f32.mrf.mxu0 }
 0x99a   : > { %v3206_v37 = vadd.f32 %v1746_v35, %v3119_v10 }
 0x99b   : > { %v2448_v38 = vpop.f32.mrf.mxu0 }
 0x99d   : > { %v1795_v40 = vpop.f32.mrf.mxu0 }
 0x99e   : > { %v1796_v41 = vadd.f32 %v1795_v40, %v3004_v52 }
 0x99f   : > { %v2453_v43 = vpop.f32.mrf.mxu0 }
 0x9a0   : > { %1802 = vmax.xlane.f32.xlu0 %v1796_v41 }
 0x9a1   : > { %v1798_v44 = vpop.f32.mrf.mxu0 }
 0x9a2   : > { %v1799_v46 = vadd.f32 %v1798_v44, %v3004_v52 }
 0x9a3   : > { %v2454_v47 = vpop.f32.mrf.mxu0 }
 0x9a4   : > { %1804 = vmax.xlane.f32.xlu1 %v1799_v46 }
 0x9b5   : > { %953 = vrot.lane.b32.xlu1 %v2957_v60, %s2717_s24 }
 0x9b6   : > { %959 = vrot.lane.b32.xlu0 %v2965_v3, %s2717_s24 }
 0x9b9   : > { %949 = vrot.lane.b32.xlu1 %v2961_v63, %s2717_s24 }
 0x9ba   : > { %955 = vrot.lane.b32.xlu0 %v2969_v6, %s2717_s24 }
 0x9bd   : > { %945 = vrot.lane.b32.xlu1 %v2941_v48, %s2717_s24 }
 0x9be   : > { %951 = vrot.lane.b32.xlu0 %v2949_v54, %s2717_s24 }
 0x9c1   : > { %941 = vrot.lane.b32.xlu1 %v2945_v51, %s2717_s24 }
 0x9c2   : > { %947 = vrot.lane.b32.xlu0 %v2953_v57, %s2717_s24 }
 0x9c5   : > { %937 = vrot.lane.b32.xlu1 %v2925_v36, %s2717_s24 }
 0x9c6   : > { %943 = vrot.lane.b32.xlu0 %v2933_v42, %s2717_s24 }
 0x9ca   : > { %939 = vrot.lane.b32.xlu0 %v2937_v45, %s2717_s24 }
 0x9ce   : > { %935 = vrot.lane.b32.xlu0 %v2917_v30, %s2717_s24 }
 0xa29   : > { %v1803_v48 = vpop.xlane.xlu0 %1802 }
 0xa2a   : > { %v1806_v54 = vsub.f32 %v1796_v41, %v1803_v48 }
 0xa2c   : > { %v1808_v60 = vmul.f32 1.442695, %v1806_v54 }
 0xa2d   : > { %v960_v63 = vpop.permute.xlu0 %959  ;;  %v1805_v51 = vpop.xlane.xlu1 %1804 }
 0xa2e   : > { %2625 = vpow2.f32 %v1808_v60  ;;  %994 = vst.msk [vmem:[#allocation3 + $0xf8] sm:$0xf] %vm784_vm3, %v960_v63  ;;  %v1807_v57 = vsub.f32 %v1799_v46, %v1805_v51 }
 0xa30   : > { %v1810_v3 = vmul.f32 1.442695, %v1807_v57 }
 0xa31   : > { %v956_v36 = vpop.permute.xlu0 %955  ;;  %v954_v6 = vpop.permute.xlu1 %953 }
 0xa32   : > { %2627 = vpow2.f32 %v1810_v3  ;;  %992 = vst.msk [vmem:[#allocation3 + $0xf0] sm:$0xf] %vm784_vm3, %v956_v36  ;;  %991 = vst.msk [vmem:[#allocation3 + $0xec] sm:$0xf] %vm784_vm3, %v954_v6 }
 0xa35   : > { %v952_v42 = vpop.permute.xlu0 %951  ;;  %v950_v45 = vpop.permute.xlu1 %949  ;;  %v2593_v30 = vld [vmem:[#allocation3 + $0xf8] sm:$0xff]  }
 0xa36   : > { %990 = vst.msk [vmem:[#allocation3 + $0xe8] sm:$0xf] %vm784_vm3, %v952_v42  ;;  %989 = vst.msk [vmem:[#allocation3 + $0xe4] sm:$0xf] %vm784_vm3, %v950_v45  ;;  %2456 = vmatpush3.bf16.msra.mxu0 %v2593_v30 }
 0xa37   : > { %2457 = vmatprep.subr.bf16.mxu0 %v2711_v2 }
 0xa39   : > { %v948_v52 = vpop.permute.xlu0 %947  ;;  %v946_v31 = vpop.permute.xlu1 %945  ;;  %v2594_v10 = vld [vmem:[#allocation3 + $0xf0] sm:$0xff]  }
 0xa3a   : > { %988 = vst.msk [vmem:[#allocation3 + $0xe0] sm:$0xf] %vm784_vm3, %v948_v52  ;;  %987 = vst.msk [vmem:[#allocation3 + $0xdc] sm:$0xf] %vm784_vm3, %v946_v31  ;;  %2458 = vmatpush3.bf16.msra.mxu0 %v2594_v10 }
 0xa3b   : > { %v2626_v19 = vpop.eup %2625  ;;  %2459 = vmatprep.subr.bf16.mxu0 %v2711_v2 }
 0xa3c   : > { %1812 = vadd.xlane.f32.xlu0 %v2626_v19 }
 0xa3d   : > { %v944_v17 = vpop.permute.xlu0 %943  ;;  %v942_v49 = vpop.permute.xlu1 %941  ;;  %v2595_v50 = vld [vmem:[#allocation3 + $0xe8] sm:$0xff]  }
 0xa3e   : > { %986 = vst.msk [vmem:[#allocation3 + $0xd8] sm:$0xf] %vm784_vm3, %v944_v17  ;;  %985 = vst.msk [vmem:[#allocation3 + $0xd4] sm:$0xf] %vm784_vm3, %v942_v49  ;;  %2460 = vmatpush3.bf16.msra.mxu0 %v2595_v50 }
 0xa3f   : > { %v2628_v53 = vpop.eup %2627  ;;  %2461 = vmatprep.subr.bf16.mxu0 %v2711_v2 }
 0xa40   : > { %1814 = vadd.xlane.f32.xlu1 %v2628_v53 }
 0xa41   : > { %v940_v55 = vpop.permute.xlu0 %939  ;;  %v938_v56 = vpop.permute.xlu1 %937  ;;  %v2596_v58 = vld [vmem:[#allocation3 + $0xe0] sm:$0xff]  }
 0xa42   : > { %984 = vst.msk [vmem:[#allocation3 + $0xd0] sm:$0xf] %vm784_vm3, %v940_v55  ;;  %983 = vst.msk [vmem:[#allocation3 + $0xcc] sm:$0xf] %vm784_vm3, %v938_v56  ;;  %2462 = vmatpush3.bf16.msra.mxu0 %v2596_v58 }
 0xa43   : > { %2463 = vmatprep.subr.bf16.mxu0 %v2711_v2 }
 0xa45   : > { %v936_v59 = vpop.permute.xlu0 %935  ;;  %v2597_v61 = vld [vmem:[#allocation3 + $0xd8] sm:$0xff]  }
 0xa46   : > { %982 = vst.msk [vmem:[#allocation3 + $0xc8] sm:$0xf] %vm784_vm3, %v936_v59  ;;  %2464 = vmatpush3.bf16.msra.mxu0 %v2597_v61 }
 0xa47   : > { %2465 = vmatprep.subr.bf16.mxu0 %v2711_v2 }
 0xa49   : > { %v2598_v62 = vld [vmem:[#allocation3 + $0xd0] sm:$0xff]  }
 0xa4a   : > { %2466 = vmatpush3.bf16.msra.mxu0 %v2598_v62 }
 0xa4b   : > { %2467 = vmatprep.subr.bf16.mxu0 %v2711_v2 }
 0xa4d   : > { %v2599_v0 = vld [vmem:[#allocation3 + $0xc8] sm:$0xff]  }
 0xa4e   : > { %2468 = vmatpush3.bf16.msra.mxu0 %v2599_v0 }
 0xa4f   : > { %2469 = vmatprep.subr.bf16.mxu0 %v2711_v2 }
 0xa51   : > { %933 = vrot.lane.b32.xlu1 %v2929_v39, %s2717_s24 }
 0xa52   : > { %931 = vrot.lane.b32.xlu0 %v2921_v33, %s2717_s24  ;;  %v1928_v33 = vld [vmem:[%s3333_s8 + $0xc] sm:$0xf]  ;;  %s2005_s24 = sshll.u32 %s392_s20, 4  ;;  %s3277_s24 = int_to_ptr.vmem [resolvable:$true] %s2005_s24 }
 0xa53   : > { %v1933_v8 = vsel %vm1083_vm4, %v1928_v33, 0  ;;  %s2633_s11 = scalar_lea.vmem %s3277_s24, 256  ;;  %p2640_p1 = scmp.lt.s32.totalorder %s3277_s24, %s2638_s19 }
 0xa54   : > { %2476 = vmatpush3.bf16.msra.mxu1 %v1933_v8  ;;  %p2634_p12 = scmp.ne.s32.totalorder %s3277_s24, %s2633_s11  ;;  %p2641_p2 = scmp.lt.s32.totalorder %s2639_s27, %s2633_s11 }
 0xa56   : > { %p2635_p13 = pnand %p2634_p12, %p2816_p4  ;;  %p2642_p3 = por %p2641_p2, %p2640_p1 }
 0xa58   : > { %p2636_p0 = pneg %p2635_p13 }
 0xa5a   : > { %p2643_p5 = pnand %p2642_p3, %p2636_p0 }
 0xac5   : > { %v1813_v1 = vpop.xlane.xlu0 %1812 }
 0xac6   : > { %2629 = vrcp.f32 %v1813_v1 }
 0xac9   : > { %v932_v4 = vpop.permute.xlu0 %931  ;;  %v1815_v5 = vpop.xlane.xlu1 %1814 }
 0xaca   : > { %980 = vst.msk [vmem:[#allocation3 + $0xc0] sm:$0xf] %vm784_vm3, %v932_v4  ;;  %2631 = vrcp.f32 %v1815_v5 }
 0xacd   : > { %v934_v34 = vpop.permute.xlu1 %933 }
 0xace   : > { %981 = vst.msk [vmem:[#allocation3 + $0xc4] sm:$0xf] %vm784_vm3, %v934_v34 }
 0xad3   : > { %v2630_v27 = vpop.eup %2629 }
 0xad4   : > { %v1818_v9 = vmul.f32 %v2630_v27, %v2626_v19 }
 0xad5   : > { %v2600_v29 = vld [vmem:[#allocation3 + $0xc0] sm:$0xff]  }
 0xad6   : > { %2470 = vmatpush3.bf16.msra.mxu0 %v2600_v29 }
 0xad7   : > { %v2632_v2 = vpop.eup %2631 }
 0xad8   : > { %v1819_v39 = vmul.f32 %v2632_v2, %v2628_v53 }
 0xada   : > { %v1820_v7 = vpack.c.bf16 %v1819_v39, %v1818_v9 }
 0xadc   : > { %2472 = vmatmul.mubr.bf16.vlgmr.msra.gmra.mxu0 %v1820_v7 }
 0xb9c   : > { %v1920_v12 = vpop.f32.mrf.mxu0 }
 0xb9e   : > { %v2473_v11 = vpop.f32.mrf.mxu0 }
 0xba0   : > { %v1923_v13 = vpop.f32.mrf.mxu0 }
 0xba1   : > { %v1927_v14 = vpack.c.bf16 %v1923_v13, %v1920_v12 }
 0xba2   : > { %v2474_v15 = vpop.f32.mrf.mxu0 }
 0xba3   : > { %2478 = vmatmul.mubr.msk.bf16.vlgmr.msra.gmra.mxu1 %vm1079_vm5, %v1927_v14 }
 0xc63   : > { %v1969_v16 = vpop.f32.mrf.mxu1 }
 0xc64   : > { %v1976_v20 = vadd.f32 %v1969_v16, %v3203_v28 }
 0xc65   : > { %v2479_v21 = vpop.f32.mrf.mxu1 }
 0xc66   : > { %v1985_v22 = vadd.f32 %v2193_v18, %v1976_v20 }
 0xc67   : > { %v1972_v23 = vpop.f32.mrf.mxu1 }
 0xc68   : > { %1987 = vst.msk [vmem:[%s392_s20] sm:$0xff] %vm1026_vm2, %v1985_v22  ;;  %v1977_v24 = vadd.f32 %v1972_v23, %v3206_v37 }
 0xc69   : > { %v2480_v25 = vpop.f32.mrf.mxu1 }
 0xc6a   : > { %v1986_v26 = vadd.f32 %v2193_v18, %v1977_v24 }
 0xc6c   : > { %1988 = vst.msk [vmem:[%s392_s20 + $0x8] sm:$0xff] %vm1026_vm2, %v1986_v26 }
 0xc6d   : > { %2646 = shalt.err (!%p2643_p5)
}
 0xc6e   : > { %s2647_s30 = scalar_lea.hbm %s3275_s22, 256  ;;  %s2651_s28 = scalar_lea.hbm %s3335_s10, 512 }
 0xc6f   : > { %p2648_p6 = scmp.ne.s32.totalorder %s3275_s22, %s2647_s30  ;;  %p2652_p10 = scmp.lt.s32.totalorder %s3275_s22, %s3335_s10 }
 0xc70   : > { %p2653_p11 = scmp.lt.s32.totalorder %s2651_s28, %s2647_s30 }
 0xc71   : > { %p2649_p7 = pnand %p2648_p6, %p2816_p4 }
 0xc72   : > { %p2654_p12 = por %p2653_p11, %p2652_p10 }
 0xc73   : > { %p2650_p9 = pneg %p2649_p7 }
 0xc75   : > { %p2655_p13 = pnand %p2654_p12, %p2650_p9 }
 0xc77   : > { %2658 = shalt.err (!%p2655_p13)
}
 0xc78   : > { %s2719_s11 = smov 128   ;;  %s2720_s19 = smov 8  }
 0xc79   : > { %2489 = dma.vmem_to_hbm [thread:$0]  (%p2816_p4), %s3277_s24, 256, %s3275_s22, %s3280_s16, %s2719_s11, %s2719_s11, %s2720_s19  }
 0xc7a PF: > { %p2495_p0 = scmp.ge.s32.totalorder %s2709_s18, 2  ;;  %s2020_s27 = sand.u32 1, %s2689_s13  }
 0xc7b   : > { %s2021_s0 = scalar_lea.sflag [#allocation5], %s2020_s27 }
 0xc7c   : > { %p2492_p1 = pnand %p2495_p0, %p2823_p8 }
 0xc7e   : > { %p2493_p2 = pneg %p2492_p1 }
 0xc80   : > { %2684 = dma.done.wait (%p2493_p2), %s2021_s0, 256  }
 0xc81   : > { %2686 = vsyncadd (%p2493_p2), %s2021_s0, 4294967040  ;;  %s23_s18 = sadd.s32 1, %s2709_s18   ;;  %s3340_s13 = smov %s2693_s14 }
 0xc82   : > { %p20_p3 = scmp.ge.s32.totalorder %s23_s18, 4   ;;  %s3341_s14 = smov %s2697_s15 }
 0xc83   : > { %s3342_s15 = smov %s2829_s26  ;;  %s3343_s16 = smov %s2705_s17 }
 0xc84   : > { %s3344_s17 = smov %s3346_s21  ;;  %22 = sbr.rel (!%p20_p3) target bundleno = 6 (0x6), region = 108 }
 0xc89   :  { %2026 = vsyncpa [#allocation5], 1 }
 0xc8a   :  { %2028 = vsyncpa [#allocation5 + $0x1], 1 }

</bundles_post_ra>
